<compile_context>
chip_gen: v7x
topology: tpu7x:2x2x1
jax: 0.10.0
libtpu: 0.0.40
codegen_flags: <defaults>
</compile_context>

<pallas_src>
import functools

import jax
import jax.numpy as jnp
from jax import lax
from jax.experimental import pallas as pl
from jax.experimental.pallas import tpu as pltpu

LN_EPS = 1e-5
TM_TARGET = 1024          # row tile target (mem-bound sweet spot, fits VMEM easily)


def _round_up(n, m):
    return ((n + m - 1) // m) * m


def _d1_kernel(r_ref, x_ref, cb_ref,
               gamma_ref, beta_ref,
               w1r_ref, w1x_ref, b1_ref,
               w2_ref, b2_ref,
               w3_ref, b3_ref,
               w4_ref, b4_ref,
               xout_ref, cls_ref):
    f32 = jnp.float32
    bf16 = jnp.bfloat16

    gamma = gamma_ref[...]
    beta = beta_ref[...]

    def layernorm(v):                       # f32 VPU math; bf16 only at the MXU
        mu = jnp.mean(v, axis=-1, keepdims=True)
        d = v - mu
        var = jnp.mean(d * d, axis=-1, keepdims=True)
        return d * lax.rsqrt(var + LN_EPS) * gamma + beta

    # Conv bias folded in here (saves an XLA pass over the conv output).
    r_ln = layernorm(r_ref[...] + cb_ref[...]).astype(bf16)
    x_ln = layernorm(x_ref[...]).astype(bf16)

    # Mlp #1: Linear(2*dim -> 2*hdim); the concat is folded into split weights.
    h = (jnp.dot(r_ln, w1r_ref[...], preferred_element_type=f32)
         + jnp.dot(x_ln, w1x_ref[...], preferred_element_type=f32)
         + b1_ref[...])
    # tanh GELU: goes to the (otherwise idle) EUP slot instead of erf on VALU.
    h = jax.nn.gelu(h, approximate=True)
    x_out = (jnp.dot(h.astype(bf16), w2_ref[...], preferred_element_type=f32)
             + b2_ref[...])
    # Store only the true feature width (block last dim == full array dim).
    xout_ref[...] = x_out[:, :xout_ref.shape[-1]].astype(xout_ref.dtype)

    # cls head: Linear -> GELU -> Linear (padded weight rows/cols stay zero).
    c = (jnp.dot(x_out.astype(bf16), w3_ref[...], preferred_element_type=f32)
         + b3_ref[...])
    c = jax.nn.gelu(c, approximate=True)
    cls = (jnp.dot(c.astype(bf16), w4_ref[...], preferred_element_type=f32)
           + b4_ref[...])
    cls_ref[...] = cls[:, :cls_ref.shape[-1]].astype(cls_ref.dtype)


def prepare_params(params, *, dim, hdim, odim):
    """One-time weight prep: pad matmul dims to 128 lanes and cast to bf16.

    Done once, outside the per-call jit, so the per-invocation cost is zero.
    Padded rows/cols are exactly zero (invariant the kernel relies on).
    """
    h2 = 2 * hdim
    H2P = _round_up(h2, 128)
    HP = _round_up(hdim, 128)
    OP = _round_up(odim, 128)
    bf16, f32 = jnp.bfloat16, jnp.float32

    def pad2(a, rows, cols):
        return jnp.pad(a, ((0, rows - a.shape[0]), (0, cols - a.shape[1])))

    w1 = params["mlp_w1"]                                    # (2*dim, 2*hdim)
    return {
        "conv_w": params["conv_w"].astype(f32),              # conv stays f32
        "conv_b": params["conv_b"].reshape(1, dim).astype(f32),
        "gamma": params["ln_w"].reshape(1, dim).astype(f32),
        "beta": params["ln_b"].reshape(1, dim).astype(f32),
        "w1r": pad2(w1[:dim], dim, H2P).astype(bf16),
        "w1x": pad2(w1[dim:], dim, H2P).astype(bf16),
        "b1": pad2(params["mlp_b1"].reshape(1, h2), 1, H2P).astype(f32),
        "w2": pad2(params["mlp_w2"], H2P, H2P).astype(bf16),
        "b2": pad2(params["mlp_b2"].reshape(1, h2), 1, H2P).astype(f32),
        "w3": pad2(params["cls_w1"], H2P, HP).astype(bf16),
        "b3": pad2(params["cls_b1"].reshape(1, hdim), 1, HP).astype(f32),
        "w4": pad2(params["cls_w2"], HP, OP).astype(bf16),
        "b4": pad2(params["cls_b2"].reshape(1, odim), 1, OP).astype(f32),
    }


@functools.partial(jax.jit,
                   static_argnames=("dim", "hdim", "odim", "channels_last"))
def d1_forward(x, res, prep, *, dim, hdim, odim, channels_last=False):
    """x: (B, H, W, dim) channels-last; res: (B, dim//2, 2H, 2W) NCHW."""
    B, H, W, _ = x.shape
    N = B * H * W
    h2 = 2 * hdim

    # --- conv (3x3, stride 2, pad 1) in XLA, emitting channels-last directly.
    # Bias is added inside the Pallas kernel (one less pass over r).
    r = lax.conv_general_dilated(
        res, prep["conv_w"], window_strides=(2, 2),
        padding=((1, 1), (1, 1)),
        dimension_numbers=("NCHW", "OIHW", "NHWC"))          # (B, H, W, dim)

    # --- flatten rows; f32 streams, no XLA-side cast/pad passes -------------
    x_flat = x.reshape(N, dim)
    r_flat = r.reshape(N, dim)
    N_pad = _round_up(N, 8)                 # sublane granularity only
    if N_pad != N:
        x_flat = jnp.pad(x_flat, ((0, N_pad - N), (0, 0)))
        r_flat = jnp.pad(r_flat, ((0, N_pad - N), (0, 0)))

    tm = TM_TARGET if N_pad >= TM_TARGET else N_pad
    grid = (pl.cdiv(N_pad, tm),)            # masked tail; no tm-multiple padding

    def row_spec(feat):
        return pl.BlockSpec((tm, feat), lambda i: (i, 0))

    def const_spec(a):
        return pl.BlockSpec(a.shape, lambda i: (0, 0))

    in_specs = [
        row_spec(dim),                       # conv output rows (f32)
        row_spec(dim),                       # x rows (f32)
        const_spec(prep["conv_b"]),
        const_spec(prep["gamma"]), const_spec(prep["beta"]),
        const_spec(prep["w1r"]), const_spec(prep["w1x"]), const_spec(prep["b1"]),
        const_spec(prep["w2"]), const_spec(prep["b2"]),
        const_spec(prep["w3"]), const_spec(prep["b3"]),
        const_spec(prep["w4"]), const_spec(prep["b4"]),
    ]
    # Narrow (unpadded) outputs: last block dim equals the full array dim.
    out_specs = [row_spec(h2), row_spec(odim)]
    out_shape = (
        jax.ShapeDtypeStruct((N_pad, h2), jnp.float32),
        jax.ShapeDtypeStruct((N_pad, odim), jnp.float32),
    )

    x_out_flat, cls_flat = pl.pallas_call(
        _d1_kernel,
        out_shape=out_shape,
        grid_spec=pltpu.PrefetchScalarGridSpec(
            num_scalar_prefetch=0,
            grid=grid,
            in_specs=in_specs,
            out_specs=out_specs,
        ),
        compiler_params=pltpu.CompilerParams(
            dimension_semantics=("parallel",),
        ),
    )(r_flat, x_flat, prep["conv_b"], prep["gamma"], prep["beta"],
      prep["w1r"], prep["w1x"], prep["b1"], prep["w2"], prep["b2"],
      prep["w3"], prep["b3"], prep["w4"], prep["b4"])

    x_out = x_out_flat[:N].reshape(B, H, W, h2)
    cls_out = cls_flat[:N].reshape(B, H, W, odim)
    if channels_last:
        # Consumers that accept channels-last skip the layout passes entirely.
        return x_out, cls_out
    # NCHW to match the PyTorch return layout (now over narrow, unpadded data).
    return (jnp.transpose(x_out, (0, 3, 1, 2)),
            jnp.transpose(cls_out, (0, 3, 1, 2)))


def _reference(x, res, params, *, dim, hdim, odim):
    """Pure-JAX f32 reference matching the PyTorch forward (for validation)."""
    res_c = lax.conv_general_dilated(
        res, params["conv_w"], window_strides=(2, 2), padding=((1, 1), (1, 1)),
        dimension_numbers=("NCHW", "OIHW", "NCHW"))
    res_c = res_c + params["conv_b"][None, :, None, None]

    def ln(v):
        mu = jnp.mean(v, axis=-1, keepdims=True)
        var = jnp.mean((v - mu) ** 2, axis=-1, keepdims=True)
        return (v - mu) / jnp.sqrt(var + LN_EPS) * params["ln_w"] + params["ln_b"]

    x_ln = ln(x)
    res_ln = ln(jnp.transpose(res_c, (0, 2, 3, 1)))
    xres = jnp.concatenate([res_ln, x_ln], axis=-1)
    h = jax.nn.gelu(xres @ params["mlp_w1"] + params["mlp_b1"], approximate=False)
    xo = h @ params["mlp_w2"] + params["mlp_b2"]
    c = jax.nn.gelu(xo @ params["cls_w1"] + params["cls_b1"], approximate=False)
    cls = c @ params["cls_w2"] + params["cls_b2"]
    return jnp.transpose(xo, (0, 3, 1, 2)), jnp.transpose(cls, (0, 3, 1, 2))


def init_params(key, dim, hdim, odim):
    # TODO(synk): `Mlp` is not defined in the source file; assumed to be the
    # standard Linear -> GELU -> Linear block (timm-style, no dropout).
    ks = jax.random.split(key, 12)
    s = 0.1
    return {
        "conv_w": s * jax.random.normal(ks[0], (dim, dim // 2, 3, 3), jnp.float32),
        "conv_b": s * jax.random.normal(ks[1], (dim,), jnp.float32),
        "ln_w": jnp.ones((dim,), jnp.float32)
                + 0.01 * jax.random.normal(ks[2], (dim,), jnp.float32),
        "ln_b": s * jax.random.normal(ks[3], (dim,), jnp.float32),
        "mlp_w1": s * jax.random.normal(ks[4], (2 * dim, 2 * hdim), jnp.float32),
        "mlp_b1": s * jax.random.normal(ks[5], (2 * hdim,), jnp.float32),
        "mlp_w2": s * jax.random.normal(ks[6], (2 * hdim, 2 * hdim), jnp.float32),
        "mlp_b2": s * jax.random.normal(ks[7], (2 * hdim,), jnp.float32),
        "cls_w1": s * jax.random.normal(ks[8], (2 * hdim, hdim), jnp.float32),
        "cls_b1": s * jax.random.normal(ks[9], (hdim,), jnp.float32),
        "cls_w2": s * jax.random.normal(ks[10], (hdim, odim), jnp.float32),
        "cls_b2": s * jax.random.normal(ks[11], (odim,), jnp.float32),
    }


if __name__ == "__main__":
    dim, hdim, odim = 8, 16, 4
    B, H, W = 2, 8, 8                      # x spatial; res spatial is 2H x 2W

    root = jax.random.PRNGKey(0)
    kx, kres, kp = jax.random.split(root, 3)
    x = jax.random.normal(kx, (B, H, W, dim), jnp.float32)       # channels-last
    res = jax.random.normal(kres, (B, dim // 2, 2 * H, 2 * W), jnp.float32)  # NCHW
    params = init_params(kp, dim, hdim, odim)

    prep = prepare_params(params, dim=dim, hdim=hdim, odim=odim)  # one-time
    x_out, cls_out = d1_forward(x, res, prep, dim=dim, hdim=hdim, odim=odim)
    jax.block_until_ready((x_out, cls_out))

    assert x_out.shape == (B, 2 * hdim, H, W)
    assert cls_out.shape == (B, odim, H, W)

    x_ref, cls_ref = _reference(x, res, params, dim=dim, hdim=hdim, odim=odim)
    # bf16 MXU operands (f32 accumulation) + tanh GELU vs f32/erf reference.
    assert jnp.allclose(x_out, x_ref, atol=2e-2, rtol=2e-2)
    assert jnp.allclose(cls_out, cls_ref, atol=2e-2, rtol=2e-2)

    print("KERNEL_OK")
</pallas_src>

<mosaic_0001>
module attributes {stable_mosaic.version = 11 : i64} {
  func.func @_d1_kernel(%arg0: i32, %arg1: memref<128x8xf32, #tpu.memory_space<vmem>>, %arg2: memref<128x8xf32, #tpu.memory_space<vmem>>, %arg3: memref<1x8xf32, #tpu.memory_space<vmem>>, %arg4: memref<1x8xf32, #tpu.memory_space<vmem>>, %arg5: memref<1x8xf32, #tpu.memory_space<vmem>>, %arg6: memref<8x128xbf16, #tpu.memory_space<vmem>>, %arg7: memref<8x128xbf16, #tpu.memory_space<vmem>>, %arg8: memref<1x128xf32, #tpu.memory_space<vmem>>, %arg9: memref<128x128xbf16, #tpu.memory_space<vmem>>, %arg10: memref<1x128xf32, #tpu.memory_space<vmem>>, %arg11: memref<128x128xbf16, #tpu.memory_space<vmem>>, %arg12: memref<1x128xf32, #tpu.memory_space<vmem>>, %arg13: memref<128x128xbf16, #tpu.memory_space<vmem>>, %arg14: memref<1x128xf32, #tpu.memory_space<vmem>>, %arg15: memref<128x32xf32, #tpu.memory_space<vmem>>, %arg16: memref<128x4xf32, #tpu.memory_space<vmem>>) attributes {dimension_semantics = [#tpu.dimension_semantics<parallel>], iteration_bounds = array<i64: 1>, scalar_prefetch = 0 : i64, scratch_operands = 0 : i64, tpu.core_type = #tpu.core_type<tc>, window_params = [{transform_indices = @transform_0, window_bounds = array<i64: 128, 8>}, {transform_indices = @transform_1, window_bounds = array<i64: 128, 8>}, {pipeline_mode = #tpu.pipeline_mode<synchronous>, transform_indices = @transform_2, window_bounds = array<i64: 1, 8>}, {pipeline_mode = #tpu.pipeline_mode<synchronous>, transform_indices = @transform_3, window_bounds = array<i64: 1, 8>}, {pipeline_mode = #tpu.pipeline_mode<synchronous>, transform_indices = @transform_4, window_bounds = array<i64: 1, 8>}, {pipeline_mode = #tpu.pipeline_mode<synchronous>, transform_indices = @transform_5, window_bounds = array<i64: 8, 128>}, {pipeline_mode = #tpu.pipeline_mode<synchronous>, transform_indices = @transform_6, window_bounds = array<i64: 8, 128>}, {pipeline_mode = #tpu.pipeline_mode<synchronous>, transform_indices = @transform_7, window_bounds = array<i64: 1, 128>}, {pipeline_mode = #tpu.pipeline_mode<synchronous>, transform_indices = @transform_8, window_bounds = array<i64: 128, 128>}, {pipeline_mode = #tpu.pipeline_mode<synchronous>, transform_indices = @transform_9, window_bounds = array<i64: 1, 128>}, {pipeline_mode = #tpu.pipeline_mode<synchronous>, transform_indices = @transform_10, window_bounds = array<i64: 128, 128>}, {pipeline_mode = #tpu.pipeline_mode<synchronous>, transform_indices = @transform_11, window_bounds = array<i64: 1, 128>}, {pipeline_mode = #tpu.pipeline_mode<synchronous>, transform_indices = @transform_12, window_bounds = array<i64: 128, 128>}, {pipeline_mode = #tpu.pipeline_mode<synchronous>, transform_indices = @transform_13, window_bounds = array<i64: 1, 128>}, {transform_indices = @transform_14, window_bounds = array<i64: 128, 32>}, {transform_indices = @transform_15, window_bounds = array<i64: 128, 4>}]} {
    %c0 = arith.constant 0 : index
    %c0_0 = arith.constant 0 : index
    %0 = vector.load %arg4[%c0, %c0_0] : memref<1x8xf32, #tpu.memory_space<vmem>>, vector<1x8xf32>
    %c0_1 = arith.constant 0 : index
    %c0_2 = arith.constant 0 : index
    %1 = vector.load %arg5[%c0_1, %c0_2] : memref<1x8xf32, #tpu.memory_space<vmem>>, vector<1x8xf32>
    %c0_3 = arith.constant 0 : index
    %c0_4 = arith.constant 0 : index
    %2 = vector.load %arg1[%c0_3, %c0_4] : memref<128x8xf32, #tpu.memory_space<vmem>>, vector<128x8xf32>
    %c0_5 = arith.constant 0 : index
    %c0_6 = arith.constant 0 : index
    %3 = vector.load %arg3[%c0_5, %c0_6] : memref<1x8xf32, #tpu.memory_space<vmem>>, vector<1x8xf32>
    %4 = vector.broadcast %3 : vector<1x8xf32> to vector<128x8xf32>
    %5 = arith.addf %2, %4 : vector<128x8xf32>
    %cst = arith.constant dense<0.000000e+00> : vector<128xf32>
    %6 = vector.multi_reduction <add>, %5, %cst [1] : vector<128x8xf32> to vector<128xf32>
    %7 = vector.shape_cast %6 : vector<128xf32> to vector<128x1xf32>
    %cst_7 = arith.constant 8.000000e+00 : f32
    %8 = vector.broadcast %cst_7 : f32 to vector<128x1xf32>
    %9 = arith.divf %7, %8 : vector<128x1xf32>
    %10 = vector.broadcast %9 : vector<128x1xf32> to vector<128x8xf32>
    %11 = arith.subf %5, %10 : vector<128x8xf32>
    %12 = arith.mulf %11, %11 : vector<128x8xf32>
    %cst_8 = arith.constant dense<0.000000e+00> : vector<128xf32>
    %13 = vector.multi_reduction <add>, %12, %cst_8 [1] : vector<128x8xf32> to vector<128xf32>
    %14 = vector.shape_cast %13 : vector<128xf32> to vector<128x1xf32>
    %cst_9 = arith.constant 8.000000e+00 : f32
    %15 = vector.broadcast %cst_9 : f32 to vector<128x1xf32>
    %16 = arith.divf %14, %15 : vector<128x1xf32>
    %cst_10 = arith.constant 9.99999974E-6 : f32
    %17 = vector.broadcast %cst_10 : f32 to vector<128x1xf32>
    %18 = arith.addf %16, %17 : vector<128x1xf32>
    %19 = math.rsqrt %18 : vector<128x1xf32>
    %20 = vector.broadcast %19 : vector<128x1xf32> to vector<128x8xf32>
    %21 = arith.mulf %11, %20 : vector<128x8xf32>
    %22 = vector.broadcast %0 : vector<1x8xf32> to vector<128x8xf32>
    %23 = arith.mulf %21, %22 : vector<128x8xf32>
    %24 = vector.broadcast %1 : vector<1x8xf32> to vector<128x8xf32>
    %25 = arith.addf %23, %24 : vector<128x8xf32>
    %26 = arith.truncf %25 : vector<128x8xf32> to vector<128x8xbf16>
    %c0_11 = arith.constant 0 : index
    %c0_12 = arith.constant 0 : index
    %27 = vector.load %arg2[%c0_11, %c0_12] : memref<128x8xf32, #tpu.memory_space<vmem>>, vector<128x8xf32>
    %cst_13 = arith.constant dense<0.000000e+00> : vector<128xf32>
    %28 = vector.multi_reduction <add>, %27, %cst_13 [1] : vector<128x8xf32> to vector<128xf32>
    %29 = vector.shape_cast %28 : vector<128xf32> to vector<128x1xf32>
    %cst_14 = arith.constant 8.000000e+00 : f32
    %30 = vector.broadcast %cst_14 : f32 to vector<128x1xf32>
    %31 = arith.divf %29, %30 : vector<128x1xf32>
    %32 = vector.broadcast %31 : vector<128x1xf32> to vector<128x8xf32>
    %33 = arith.subf %27, %32 : vector<128x8xf32>
    %34 = arith.mulf %33, %33 : vector<128x8xf32>
    %cst_15 = arith.constant dense<0.000000e+00> : vector<128xf32>
    %35 = vector.multi_reduction <add>, %34, %cst_15 [1] : vector<128x8xf32> to vector<128xf32>
    %36 = vector.shape_cast %35 : vector<128xf32> to vector<128x1xf32>
    %cst_16 = arith.constant 8.000000e+00 : f32
    %37 = vector.broadcast %cst_16 : f32 to vector<128x1xf32>
    %38 = arith.divf %36, %37 : vector<128x1xf32>
    %cst_17 = arith.constant 9.99999974E-6 : f32
    %39 = vector.broadcast %cst_17 : f32 to vector<128x1xf32>
    %40 = arith.addf %38, %39 : vector<128x1xf32>
    %41 = math.rsqrt %40 : vector<128x1xf32>
    %42 = vector.broadcast %41 : vector<128x1xf32> to vector<128x8xf32>
    %43 = arith.mulf %33, %42 : vector<128x8xf32>
    %44 = vector.broadcast %0 : vector<1x8xf32> to vector<128x8xf32>
    %45 = arith.mulf %43, %44 : vector<128x8xf32>
    %46 = vector.broadcast %1 : vector<1x8xf32> to vector<128x8xf32>
    %47 = arith.addf %45, %46 : vector<128x8xf32>
    %48 = arith.truncf %47 : vector<128x8xf32> to vector<128x8xbf16>
    %c0_18 = arith.constant 0 : index
    %c0_19 = arith.constant 0 : index
    %49 = vector.load %arg6[%c0_18, %c0_19] : memref<8x128xbf16, #tpu.memory_space<vmem>>, vector<8x128xbf16>
    %cst_20 = arith.constant dense<0.000000e+00> : vector<128x128xf32>
    %50 = tpu.matmul %26, %49, %cst_20 {dimension_numbers = #tpu.dot_dimension_numbers<[1], [0], [0], [1], [0, 0, 1, 1], [], []>} : vector<128x8xbf16>, vector<8x128xbf16>, vector<128x128xf32> -> vector<128x128xf32>
    %c0_21 = arith.constant 0 : index
    %c0_22 = arith.constant 0 : index
    %51 = vector.load %arg7[%c0_21, %c0_22] : memref<8x128xbf16, #tpu.memory_space<vmem>>, vector<8x128xbf16>
    %cst_23 = arith.constant dense<0.000000e+00> : vector<128x128xf32>
    %52 = tpu.matmul %48, %51, %cst_23 {dimension_numbers = #tpu.dot_dimension_numbers<[1], [0], [0], [1], [0, 0, 1, 1], [], []>} : vector<128x8xbf16>, vector<8x128xbf16>, vector<128x128xf32> -> vector<128x128xf32>
    %53 = arith.addf %50, %52 : vector<128x128xf32>
    %c0_24 = arith.constant 0 : index
    %c0_25 = arith.constant 0 : index
    %54 = vector.load %arg8[%c0_24, %c0_25] : memref<1x128xf32, #tpu.memory_space<vmem>>, vector<1x128xf32>
    %55 = vector.broadcast %54 : vector<1x128xf32> to vector<128x128xf32>
    %56 = arith.addf %53, %55 : vector<128x128xf32>
    %57 = arith.mulf %56, %56 : vector<128x128xf32>
    %58 = arith.mulf %56, %57 : vector<128x128xf32>
    %cst_26 = arith.constant 4.471500e-02 : f32
    %59 = vector.broadcast %cst_26 : f32 to vector<128x128xf32>
    %60 = arith.mulf %59, %58 : vector<128x128xf32>
    %61 = arith.addf %56, %60 : vector<128x128xf32>
    %cst_27 = arith.constant 0.797884583 : f32
    %62 = vector.broadcast %cst_27 : f32 to vector<128x128xf32>
    %63 = arith.mulf %62, %61 : vector<128x128xf32>
    %64 = math.tanh %63 : vector<128x128xf32>
    %cst_28 = arith.constant 1.000000e+00 : f32
    %65 = vector.broadcast %cst_28 : f32 to vector<128x128xf32>
    %66 = arith.addf %65, %64 : vector<128x128xf32>
    %cst_29 = arith.constant 5.000000e-01 : f32
    %67 = vector.broadcast %cst_29 : f32 to vector<128x128xf32>
    %68 = arith.mulf %67, %66 : vector<128x128xf32>
    %69 = arith.mulf %56, %68 : vector<128x128xf32>
    %70 = arith.truncf %69 : vector<128x128xf32> to vector<128x128xbf16>
    %c0_30 = arith.constant 0 : index
    %c0_31 = arith.constant 0 : index
    %71 = vector.load %arg9[%c0_30, %c0_31] : memref<128x128xbf16, #tpu.memory_space<vmem>>, vector<128x128xbf16>
    %cst_32 = arith.constant dense<0.000000e+00> : vector<128x128xf32>
    %72 = tpu.matmul %70, %71, %cst_32 {dimension_numbers = #tpu.dot_dimension_numbers<[1], [0], [0], [1], [0, 0, 1, 1], [], []>} : vector<128x128xbf16>, vector<128x128xbf16>, vector<128x128xf32> -> vector<128x128xf32>
    %c0_33 = arith.constant 0 : index
    %c0_34 = arith.constant 0 : index
    %73 = vector.load %arg10[%c0_33, %c0_34] : memref<1x128xf32, #tpu.memory_space<vmem>>, vector<1x128xf32>
    %74 = vector.broadcast %73 : vector<1x128xf32> to vector<128x128xf32>
    %75 = arith.addf %72, %74 : vector<128x128xf32>
    %76 = vector.extract_strided_slice %75 {offsets = [0, 0], sizes = [128, 32], strides = [1, 1]} : vector<128x128xf32> to vector<128x32xf32>
    %c0_35 = arith.constant 0 : index
    %c0_36 = arith.constant 0 : index
    %77 = vector.load %arg15[%c0_35, %c0_36] : memref<128x32xf32, #tpu.memory_space<vmem>>, vector<128x32xf32>
    tpu.vector_store %arg15[%c0_35, %c0_36], %76 {strides = array<i32>} : memref<128x32xf32, #tpu.memory_space<vmem>>, vector<128x32xf32>,
    %78 = arith.truncf %75 : vector<128x128xf32> to vector<128x128xbf16>
    %c0_37 = arith.constant 0 : index
    %c0_38 = arith.constant 0 : index
    %79 = vector.load %arg11[%c0_37, %c0_38] : memref<128x128xbf16, #tpu.memory_space<vmem>>, vector<128x128xbf16>
    %cst_39 = arith.constant dense<0.000000e+00> : vector<128x128xf32>
    %80 = tpu.matmul %78, %79, %cst_39 {dimension_numbers = #tpu.dot_dimension_numbers<[1], [0], [0], [1], [0, 0, 1, 1], [], []>} : vector<128x128xbf16>, vector<128x128xbf16>, vector<128x128xf32> -> vector<128x128xf32>
    %c0_40 = arith.constant 0 : index
    %c0_41 = arith.constant 0 : index
    %81 = vector.load %arg12[%c0_40, %c0_41] : memref<1x128xf32, #tpu.memory_space<vmem>>, vector<1x128xf32>
    %82 = vector.broadcast %81 : vector<1x128xf32> to vector<128x128xf32>
    %83 = arith.addf %80, %82 : vector<128x128xf32>
    %84 = arith.mulf %83, %83 : vector<128x128xf32>
    %85 = arith.mulf %83, %84 : vector<128x128xf32>
    %cst_42 = arith.constant 4.471500e-02 : f32
    %86 = vector.broadcast %cst_42 : f32 to vector<128x128xf32>
    %87 = arith.mulf %86, %85 : vector<128x128xf32>
    %88 = arith.addf %83, %87 : vector<128x128xf32>
    %cst_43 = arith.constant 0.797884583 : f32
    %89 = vector.broadcast %cst_43 : f32 to vector<128x128xf32>
    %90 = arith.mulf %89, %88 : vector<128x128xf32>
    %91 = math.tanh %90 : vector<128x128xf32>
    %cst_44 = arith.constant 1.000000e+00 : f32
    %92 = vector.broadcast %cst_44 : f32 to vector<128x128xf32>
    %93 = arith.addf %92, %91 : vector<128x128xf32>
    %cst_45 = arith.constant 5.000000e-01 : f32
    %94 = vector.broadcast %cst_45 : f32 to vector<128x128xf32>
    %95 = arith.mulf %94, %93 : vector<128x128xf32>
    %96 = arith.mulf %83, %95 : vector<128x128xf32>
    %97 = arith.truncf %96 : vector<128x128xf32> to vector<128x128xbf16>
    %c0_46 = arith.constant 0 : index
    %c0_47 = arith.constant 0 : index
    %98 = vector.load %arg13[%c0_46, %c0_47] : memref<128x128xbf16, #tpu.memory_space<vmem>>, vector<128x128xbf16>
    %cst_48 = arith.constant dense<0.000000e+00> : vector<128x128xf32>
    %99 = tpu.matmul %97, %98, %cst_48 {dimension_numbers = #tpu.dot_dimension_numbers<[1], [0], [0], [1], [0, 0, 1, 1], [], []>} : vector<128x128xbf16>, vector<128x128xbf16>, vector<128x128xf32> -> vector<128x128xf32>
    %c0_49 = arith.constant 0 : index
    %c0_50 = arith.constant 0 : index
    %100 = vector.load %arg14[%c0_49, %c0_50] : memref<1x128xf32, #tpu.memory_space<vmem>>, vector<1x128xf32>
    %101 = vector.broadcast %100 : vector<1x128xf32> to vector<128x128xf32>
    %102 = arith.addf %99, %101 : vector<128x128xf32>
    %103 = vector.extract_strided_slice %102 {offsets = [0, 0], sizes = [128, 4], strides = [1, 1]} : vector<128x128xf32> to vector<128x4xf32>
    %c0_51 = arith.constant 0 : index
    %c0_52 = arith.constant 0 : index
    %104 = vector.load %arg16[%c0_51, %c0_52] : memref<128x4xf32, #tpu.memory_space<vmem>>, vector<128x4xf32>
    tpu.vector_store %arg16[%c0_51, %c0_52], %103 {strides = array<i32>} : memref<128x4xf32, #tpu.memory_space<vmem>>, vector<128x4xf32>,
    return
  }
  func.func @transform_0(%arg0: i32) -> (i32, i32) {
    %c0_i32 = arith.constant 0 : i32
    %c0_i32_0 = arith.constant 0 : i32
    return %arg0, %c0_i32 : i32, i32
  }
  func.func @transform_1(%arg0: i32) -> (i32, i32) {
    %c0_i32 = arith.constant 0 : i32
    %c0_i32_0 = arith.constant 0 : i32
    return %arg0, %c0_i32 : i32, i32
  }
  func.func @transform_2(%arg0: i32) -> (i32, i32) {
    %c0_i32 = arith.constant 0 : i32
    %c0_i32_0 = arith.constant 0 : i32
    %c0_i32_1 = arith.constant 0 : i32
    return %c0_i32, %c0_i32_0 : i32, i32
  }
  func.func @transform_3(%arg0: i32) -> (i32, i32) {
    %c0_i32 = arith.constant 0 : i32
    %c0_i32_0 = arith.constant 0 : i32
    %c0_i32_1 = arith.constant 0 : i32
    return %c0_i32, %c0_i32_0 : i32, i32
  }
  func.func @transform_4(%arg0: i32) -> (i32, i32) {
    %c0_i32 = arith.constant 0 : i32
    %c0_i32_0 = arith.constant 0 : i32
    %c0_i32_1 = arith.constant 0 : i32
    return %c0_i32, %c0_i32_0 : i32, i32
  }
  func.func @transform_5(%arg0: i32) -> (i32, i32) {
    %c0_i32 = arith.constant 0 : i32
    %c0_i32_0 = arith.constant 0 : i32
    %c0_i32_1 = arith.constant 0 : i32
    return %c0_i32, %c0_i32_0 : i32, i32
  }
  func.func @transform_6(%arg0: i32) -> (i32, i32) {
    %c0_i32 = arith.constant 0 : i32
    %c0_i32_0 = arith.constant 0 : i32
    %c0_i32_1 = arith.constant 0 : i32
    return %c0_i32, %c0_i32_0 : i32, i32
  }
  func.func @transform_7(%arg0: i32) -> (i32, i32) {
    %c0_i32 = arith.constant 0 : i32
    %c0_i32_0 = arith.constant 0 : i32
    %c0_i32_1 = arith.constant 0 : i32
    return %c0_i32, %c0_i32_0 : i32, i32
  }
  func.func @transform_8(%arg0: i32) -> (i32, i32) {
    %c0_i32 = arith.constant 0 : i32
    %c0_i32_0 = arith.constant 0 : i32
    %c0_i32_1 = arith.constant 0 : i32
    return %c0_i32, %c0_i32_0 : i32, i32
  }
  func.func @transform_9(%arg0: i32) -> (i32, i32) {
    %c0_i32 = arith.constant 0 : i32
    %c0_i32_0 = arith.constant 0 : i32
    %c0_i32_1 = arith.constant 0 : i32
    return %c0_i32, %c0_i32_0 : i32, i32
  }
  func.func @transform_10(%arg0: i32) -> (i32, i32) {
    %c0_i32 = arith.constant 0 : i32
    %c0_i32_0 = arith.constant 0 : i32
    %c0_i32_1 = arith.constant 0 : i32
    return %c0_i32, %c0_i32_0 : i32, i32
  }
  func.func @transform_11(%arg0: i32) -> (i32, i32) {
    %c0_i32 = arith.constant 0 : i32
    %c0_i32_0 = arith.constant 0 : i32
    %c0_i32_1 = arith.constant 0 : i32
    return %c0_i32, %c0_i32_0 : i32, i32
  }
  func.func @transform_12(%arg0: i32) -> (i32, i32) {
    %c0_i32 = arith.constant 0 : i32
    %c0_i32_0 = arith.constant 0 : i32
    %c0_i32_1 = arith.constant 0 : i32
    return %c0_i32, %c0_i32_0 : i32, i32
  }
  func.func @transform_13(%arg0: i32) -> (i32, i32) {
    %c0_i32 = arith.constant 0 : i32
    %c0_i32_0 = arith.constant 0 : i32
    %c0_i32_1 = arith.constant 0 : i32
    return %c0_i32, %c0_i32_0 : i32, i32
  }
  func.func @transform_14(%arg0: i32) -> (i32, i32) {
    %c0_i32 = arith.constant 0 : i32
    %c0_i32_0 = arith.constant 0 : i32
    return %arg0, %c0_i32 : i32, i32
  }
  func.func @transform_15(%arg0: i32) -> (i32, i32) {
    %c0_i32 = arith.constant 0 : i32
    %c0_i32_0 = arith.constant 0 : i32
    return %arg0, %c0_i32 : i32, i32
  }
}

</mosaic_0001>

<bundles_post_ra>
// kernel: d1_forward.1
= control target key start
LH: loop header
LB: loop body
LE: loop exit
PB: predicated region body
PF: predicated region fallthrough
CT: control target
= control target key end

     0   :  { %vm92_vm0 = vcmask 64512   ;;  %s3281_s0 = inlined_call_operand.vmem [shape: f32[128,8], index: 0, kind: input, shape index: {}]   ;;  %s3282_s1 = inlined_call_operand.vmem [shape: f32[128,8], index: 1, kind: input, shape index: {}]   ;;  %s3283_s2 = inlined_call_operand.vmem [shape: f32[1,8], index: 2, kind: input, shape index: {}]   ;;  %s3284_s3 = inlined_call_operand.vmem [shape: f32[1,8], index: 3, kind: input, shape index: {}]   ;;  %s3285_s4 = inlined_call_operand.vmem [shape: f32[1,8], index: 4, kind: input, shape index: {}]   ;;  %s3286_s5 = inlined_call_operand.vmem [shape: bf16[8,128], index: 5, kind: input, shape index: {}]   ;;  %s3287_s6 = inlined_call_operand.vmem [shape: bf16[8,128], index: 6, kind: input, shape index: {}]   ;;  %s3288_s7 = inlined_call_operand.vmem [shape: f32[1,128], index: 7, kind: input, shape index: {}]   ;;  %s3289_s8 = inlined_call_operand.vmem [shape: bf16[128,128], index: 8, kind: input, shape index: {}]   ;;  %s3290_s9 = inlined_call_operand.vmem [shape: f32[1,128], index: 9, kind: input, shape index: {}]   ;;  %s3291_s10 = inlined_call_operand.vmem [shape: bf16[128,128], index: 10, kind: input, shape index: {}]   ;;  %s3292_s11 = inlined_call_operand.vmem [shape: f32[1,128], index: 11, kind: input, shape index: {}]   ;;  %s3293_s12 = inlined_call_operand.vmem [shape: bf16[128,128], index: 12, kind: input, shape index: {}]   ;;  %s3294_s13 = inlined_call_operand.vmem [shape: f32[1,128], index: 13, kind: input, shape index: {}]   ;;  %s3295_s14 = inlined_call_operand.hbm [shape: f32[128,32], index: 14, kind: output, shape index: {0}]   ;;  %s3296_s15 = inlined_call_operand.vmem [shape: f32[128,4], index: 15, kind: output, shape index: {1}]  }
   0x1   :  { %v2290_v0 = vld [vmem:[%s3282_s1] sm:$0xff]  ;;  %v2295_v1 = vld [vmem:[%s3282_s1 + $0x10] sm:$0xff]  ;;  %v2300_v2 = vld [vmem:[%s3282_s1 + $0x8] sm:$0xff] }
   0x2   :  { %v370_v3 = vsel %vm92_vm0, %v2290_v0, 0.0  ;;  %v376_v4 = vsel %vm92_vm0, %v2295_v1, 0.0  ;;  %v2309_v5 = vld [vmem:[%s3282_s1 + $0x18] sm:$0xff]  ;;  %v373_v6 = vsel %vm92_vm0, %v2300_v2, 0.0  ;;  %v2318_v8 = vld [vmem:[%s3282_s1 + $0x20] sm:$0xff]  ;;  %v2323_v9 = vld [vmem:[%s3282_s1 + $0x28] sm:$0xff] }
   0x3   :  { %371 = vadd.xlane.f32.xlu0 %v370_v3  ;;  %377 = vadd.xlane.f32.xlu1 %v376_v4  ;;  %v379_v7 = vsel %vm92_vm0, %v2309_v5, 0.0  ;;  %v382_v10 = vsel %vm92_vm0, %v2318_v8, 0.0  ;;  %v385_v11 = vsel %vm92_vm0, %v2323_v9, 0.0  ;;  %v2332_v12 = vld [vmem:[%s3282_s1 + $0x30] sm:$0xff]  ;;  %v2337_v13 = vld [vmem:[%s3282_s1 + $0x38] sm:$0xff]  ;;  %v2342_v14 = vld [vmem:[%s3282_s1 + $0x40] sm:$0xff] }
   0x4   :  { %v2347_v15 = vld [vmem:[%s3282_s1 + $0x48] sm:$0xff]  ;;  %v388_v16 = vsel %vm92_vm0, %v2332_v12, 0.0  ;;  %v2354_v17 = vld [vmem:[%s3282_s1 + $0x50] sm:$0xff]  ;;  %v2359_v18 = vld [vmem:[%s3282_s1 + $0x58] sm:$0xff]  ;;  %v391_v20 = vsel %vm92_vm0, %v2337_v13, 0.0  ;;  %v394_v22 = vsel %vm92_vm0, %v2342_v14, 0.0 }
   0x5   :  { %v2364_v19 = vld [vmem:[%s3282_s1 + $0x60] sm:$0xff]  ;;  %v2371_v21 = vld [vmem:[%s3282_s1 + $0x68] sm:$0xff]  ;;  %v397_v23 = vsel %vm92_vm0, %v2347_v15, 0.0  ;;  %v2380_v24 = vld [vmem:[%s3282_s1 + $0x70] sm:$0xff]  ;;  %v400_v26 = vsel %vm92_vm0, %v2354_v17, 0.0  ;;  %v403_v27 = vsel %vm92_vm0, %v2359_v18, 0.0 }
   0x6   :  { %v2385_v25 = vld [vmem:[%s3282_s1 + $0x78] sm:$0xff]  ;;  %v406_v28 = vsel %vm92_vm0, %v2364_v19, 0.0  ;;  %v409_v29 = vsel %vm92_vm0, %v2371_v21, 0.0  ;;  %v412_v30 = vsel %vm92_vm0, %v2380_v24, 0.0  ;;  %v53_v32 = vld [vmem:[%s3281_s0] sm:$0xff]  ;;  %v54_v34 = vld [vmem:[%s3281_s0 + $0x8] sm:$0xff] }
   0x7   :  { %374 = vadd.xlane.f32.xlu0 %v373_v6  ;;  %380 = vadd.xlane.f32.xlu1 %v379_v7  ;;  %v415_v31 = vsel %vm92_vm0, %v2385_v25, 0.0  ;;  %v1762_v33 = vld [vmem:[%s3283_s2] ss:$0 sm:$0xff]  ;;  %v55_v35 = vld [vmem:[%s3281_s0 + $0x10] sm:$0xff]  ;;  %v56_v36 = vld [vmem:[%s3281_s0 + $0x18] sm:$0xff] }
   0x8   :  { %v2414_v37 = vadd.f32 %v1762_v33, %v53_v32  ;;  %v2416_v38 = vadd.f32 %v1762_v33, %v54_v34 }
   0xb   :  { %383 = vadd.xlane.f32.xlu0 %v382_v10  ;;  %386 = vadd.xlane.f32.xlu1 %v385_v11 }
   0xf   :  { %389 = vadd.xlane.f32.xlu0 %v388_v16  ;;  %392 = vadd.xlane.f32.xlu1 %v391_v20 }
  0x13   :  { %395 = vadd.xlane.f32.xlu0 %v394_v22  ;;  %398 = vadd.xlane.f32.xlu1 %v397_v23 }
  0x17   :  { %401 = vadd.xlane.f32.xlu0 %v400_v26  ;;  %404 = vadd.xlane.f32.xlu1 %v403_v27 }
  0x1b   :  { %407 = vadd.xlane.f32.xlu0 %v406_v28  ;;  %410 = vadd.xlane.f32.xlu1 %v409_v29 }
  0x1c   :  { %21 = vsyncpa [#allocation3], 0  ;;  %v93_v39 = vsel %vm92_vm0, %v2414_v37, 0.0  ;;  %v96_v40 = vsel %vm92_vm0, %v2416_v38, 0.0  ;;  %v2422_v41 = vadd.f32 %v1762_v33, %v55_v35  ;;  %v2424_v42 = vadd.f32 %v1762_v33, %v56_v36  ;;  %v57_v43 = vld [vmem:[%s3281_s0 + $0x20] sm:$0xff]  ;;  %v58_v44 = vld [vmem:[%s3281_s0 + $0x28] sm:$0xff] }
  0x1d   :  { %v2436_v47 = vadd.f32 %v1762_v33, %v57_v43  ;;  %v2438_v48 = vadd.f32 %v1762_v33, %v58_v44  ;;  %v59_v49 = vld [vmem:[%s3281_s0 + $0x30] sm:$0xff]  ;;  %v60_v50 = vld [vmem:[%s3281_s0 + $0x38] sm:$0xff]  ;;  %v61_v55 = vld [vmem:[%s3281_s0 + $0x40] sm:$0xff]  ;;  %vm644_vm1 = vcmask 1043456   ;;  %vm1212_vm2 = vcmask 261120  }
  0x1e   :  { %v99_v45 = vsel %vm92_vm0, %v2422_v41, 0.0  ;;  %v102_v46 = vsel %vm92_vm0, %v2424_v42, 0.0  ;;  %v2450_v53 = vadd.f32 %v1762_v33, %v59_v49  ;;  %v2452_v54 = vadd.f32 %v1762_v33, %v60_v50  ;;  %v62_v56 = vld [vmem:[%s3281_s0 + $0x48] sm:$0xff]  ;;  %v63_v61 = vld [vmem:[%s3281_s0 + $0x50] sm:$0xff]  ;;  %v64_v62 = vld [vmem:[%s3281_s0 + $0x58] sm:$0xff] }
  0x1f   :  { %413 = vadd.xlane.f32.xlu0 %v412_v30  ;;  %416 = vadd.xlane.f32.xlu1 %v415_v31  ;;  %v105_v51 = vsel %vm92_vm0, %v2436_v47, 0.0  ;;  %v108_v52 = vsel %vm92_vm0, %v2438_v48, 0.0  ;;  %v2464_v59 = vadd.f32 %v1762_v33, %v61_v55  ;;  %v2466_v60 = vadd.f32 %v1762_v33, %v62_v56  ;;  %v65_v7 = vld [vmem:[%s3281_s0 + $0x60] sm:$0xff]  ;;  %v66_v10 = vld [vmem:[%s3281_s0 + $0x68] sm:$0xff]  ;;  %v67_v23 = vld [vmem:[%s3281_s0 + $0x70] sm:$0xff] }
  0x20   :  { %v111_v57 = vsel %vm92_vm0, %v2450_v53, 0.0  ;;  %v114_v58 = vsel %vm92_vm0, %v2452_v54, 0.0  ;;  %v2478_v4 = vadd.f32 %v1762_v33, %v63_v61  ;;  %v2480_v6 = vadd.f32 %v1762_v33, %v64_v62  ;;  %v68_v26 = vld [vmem:[%s3281_s0 + $0x78] sm:$0xff] }
  0x21   :  { %v117_v63 = vsel %vm92_vm0, %v2464_v59, 0.0  ;;  %v120_v3 = vsel %vm92_vm0, %v2466_v60, 0.0  ;;  %v2492_v20 = vadd.f32 %v1762_v33, %v65_v7  ;;  %v2494_v22 = vadd.f32 %v1762_v33, %v66_v10 }
  0x22   :  { %v123_v11 = vsel %vm92_vm0, %v2478_v4, 0.0  ;;  %v126_v16 = vsel %vm92_vm0, %v2480_v6, 0.0  ;;  %v2506_v29 = vadd.f32 %v1762_v33, %v67_v23  ;;  %v2508_v30 = vadd.f32 %v1762_v33, %v68_v26 }
  0x23   :  { %94 = vadd.xlane.f32.xlu0 %v93_v39  ;;  %97 = vadd.xlane.f32.xlu1 %v96_v40  ;;  %v129_v27 = vsel %vm92_vm0, %v2492_v20, 0.0  ;;  %v132_v28 = vsel %vm92_vm0, %v2494_v22, 0.0 }
  0x24   :  { %v135_v31 = vsel %vm92_vm0, %v2506_v29, 0.0  ;;  %v138_v32 = vsel %vm92_vm0, %v2508_v30, 0.0 }
  0x27   :  { %100 = vadd.xlane.f32.xlu0 %v99_v45  ;;  %103 = vadd.xlane.f32.xlu1 %v102_v46 }
  0x2b   :  { %106 = vadd.xlane.f32.xlu0 %v105_v51  ;;  %109 = vadd.xlane.f32.xlu1 %v108_v52 }
  0x2f   :  { %112 = vadd.xlane.f32.xlu0 %v111_v57  ;;  %115 = vadd.xlane.f32.xlu1 %v114_v58 }
  0x33   :  { %118 = vadd.xlane.f32.xlu0 %v117_v63  ;;  %121 = vadd.xlane.f32.xlu1 %v120_v3 }
  0x37   :  { %124 = vadd.xlane.f32.xlu0 %v123_v11  ;;  %127 = vadd.xlane.f32.xlu1 %v126_v16 }
  0x3b   :  { %130 = vadd.xlane.f32.xlu0 %v129_v27  ;;  %133 = vadd.xlane.f32.xlu1 %v132_v28 }
  0x3f   :  { %136 = vadd.xlane.f32.xlu0 %v135_v31  ;;  %139 = vadd.xlane.f32.xlu1 %v138_v32 }
  0x90   :  { %v372_v34 = vpop.xlane.xlu0 %371  ;;  %v378_v35 = vpop.xlane.xlu1 %377 }
  0x91   :  { %v418_v36 = vmul.f32 0.125, %v372_v34  ;;  %v420_v39 = vmul.f32 0.125, %v378_v35 }
  0x93   :  { %v2515_v40 = vsub.f32 %v2290_v0, %v418_v36  ;;  %v2518_v33 = vsub.f32 %v2295_v1, %v420_v39 }
  0x94   :  { %v375_v43 = vpop.xlane.xlu0 %374  ;;  %v381_v44 = vpop.xlane.xlu1 %380 }
  0x95   :  { %v419_v45 = vmul.f32 0.125, %v375_v43  ;;  %v421_v46 = vmul.f32 0.125, %v381_v44  ;;  %v450_v49 = vmul.f32 %v2515_v40, %v2515_v40  ;;  %v452_v50 = vmul.f32 %v2518_v33, %v2518_v33 }
  0x97   :  { %v2525_v51 = vsub.f32 %v2300_v2, %v419_v45  ;;  %v2528_v52 = vsub.f32 %v2309_v5, %v421_v46  ;;  %v466_v0 = vsel %vm92_vm0, %v450_v49, 0.0  ;;  %v472_v56 = vsel %vm92_vm0, %v452_v50, 0.0 }
  0x98   :  { %v384_v1 = vpop.xlane.xlu0 %383  ;;  %467 = vadd.xlane.f32.xlu0 %v466_v0  ;;  %v387_v55 = vpop.xlane.xlu1 %386 }
  0x99   :  { %v422_v57 = vmul.f32 0.125, %v384_v1  ;;  %v423_v58 = vmul.f32 0.125, %v387_v55  ;;  %v451_v61 = vmul.f32 %v2525_v51, %v2525_v51  ;;  %v453_v62 = vmul.f32 %v2528_v52, %v2528_v52 }
  0x9b   :  { %v2537_v2 = vsub.f32 %v2318_v8, %v422_v57  ;;  %v2540_v5 = vsub.f32 %v2323_v9, %v423_v58  ;;  %v469_v63 = vsel %vm92_vm0, %v451_v61, 0.0  ;;  %v475_v10 = vsel %vm92_vm0, %v453_v62, 0.0 }
  0x9c   :  { %v390_v3 = vpop.xlane.xlu0 %389  ;;  %470 = vadd.xlane.f32.xlu1 %v469_v63  ;;  %473 = vadd.xlane.f32.xlu0 %v472_v56  ;;  %v393_v7 = vpop.xlane.xlu1 %392 }
  0x9d   :  { %v424_v11 = vmul.f32 0.125, %v390_v3  ;;  %v425_v16 = vmul.f32 0.125, %v393_v7  ;;  %v454_v23 = vmul.f32 %v2537_v2, %v2537_v2  ;;  %v455_v8 = vmul.f32 %v2540_v5, %v2540_v5 }
  0x9f   :  { %v2549_v26 = vsub.f32 %v2332_v12, %v424_v11  ;;  %v2552_v9 = vsub.f32 %v2337_v13, %v425_v16  ;;  %v478_v27 = vsel %vm92_vm0, %v454_v23, 0.0  ;;  %v481_v32 = vsel %vm92_vm0, %v455_v8, 0.0 }
  0xa0   :  { %v396_v28 = vpop.xlane.xlu0 %395  ;;  %476 = vadd.xlane.f32.xlu1 %v475_v10  ;;  %479 = vadd.xlane.f32.xlu0 %v478_v27  ;;  %v399_v31 = vpop.xlane.xlu1 %398 }
  0xa1   :  { %v426_v34 = vmul.f32 0.125, %v396_v28  ;;  %v427_v35 = vmul.f32 0.125, %v399_v31  ;;  %v456_v36 = vmul.f32 %v2549_v26, %v2549_v26  ;;  %v457_v12 = vmul.f32 %v2552_v9, %v2552_v9 }
  0xa3   :  { %v2561_v39 = vsub.f32 %v2342_v14, %v426_v34  ;;  %v2564_v13 = vsub.f32 %v2347_v15, %v427_v35  ;;  %v484_v43 = vsel %vm92_vm0, %v456_v36, 0.0  ;;  %v487_v46 = vsel %vm92_vm0, %v457_v12, 0.0 }
  0xa4   :  { %v402_v44 = vpop.xlane.xlu0 %401  ;;  %482 = vadd.xlane.f32.xlu1 %v481_v32  ;;  %485 = vadd.xlane.f32.xlu0 %v484_v43  ;;  %v405_v45 = vpop.xlane.xlu1 %404 }
  0xa5   :  { %v428_v49 = vmul.f32 0.125, %v402_v44  ;;  %v429_v50 = vmul.f32 0.125, %v405_v45  ;;  %v458_v0 = vmul.f32 %v2561_v39, %v2561_v39  ;;  %v459_v14 = vmul.f32 %v2564_v13, %v2564_v13 }
  0xa7   :  { %v2573_v1 = vsub.f32 %v2354_v17, %v428_v49  ;;  %v2576_v15 = vsub.f32 %v2359_v18, %v429_v50  ;;  %v490_v55 = vsel %vm92_vm0, %v458_v0, 0.0  ;;  %v493_v58 = vsel %vm92_vm0, %v459_v14, 0.0 }
  0xa8   :  { %v408_v56 = vpop.xlane.xlu0 %407  ;;  %488 = vadd.xlane.f32.xlu1 %v487_v46  ;;  %491 = vadd.xlane.f32.xlu0 %v490_v55  ;;  %v411_v57 = vpop.xlane.xlu1 %410 }
  0xa9   :  { %v430_v61 = vmul.f32 0.125, %v408_v56  ;;  %v431_v62 = vmul.f32 0.125, %v411_v57  ;;  %v460_v63 = vmul.f32 %v2573_v1, %v2573_v1  ;;  %v461_v17 = vmul.f32 %v2576_v15, %v2576_v15 }
  0xab   :  { %v2585_v3 = vsub.f32 %v2364_v19, %v430_v61  ;;  %v2588_v18 = vsub.f32 %v2371_v21, %v431_v62  ;;  %v496_v7 = vsel %vm92_vm0, %v460_v63, 0.0  ;;  %v499_v16 = vsel %vm92_vm0, %v461_v17, 0.0 }
  0xac   :  { %v414_v10 = vpop.xlane.xlu0 %413  ;;  %494 = vadd.xlane.f32.xlu1 %v493_v58  ;;  %497 = vadd.xlane.f32.xlu0 %v496_v7  ;;  %v417_v11 = vpop.xlane.xlu1 %416 }
  0xad   :  { %v432_v23 = vmul.f32 0.125, %v414_v10  ;;  %v433_v8 = vmul.f32 0.125, %v417_v11  ;;  %v462_v27 = vmul.f32 %v2585_v3, %v2585_v3  ;;  %v463_v19 = vmul.f32 %v2588_v18, %v2588_v18 }
  0xaf   :  { %v2597_v28 = vsub.f32 %v2380_v24, %v432_v23  ;;  %v2600_v21 = vsub.f32 %v2385_v25, %v433_v8  ;;  %v502_v31 = vsel %vm92_vm0, %v462_v27, 0.0  ;;  %v505_v34 = vsel %vm92_vm0, %v463_v19, 0.0 }
  0xb0   :  { %500 = vadd.xlane.f32.xlu1 %v499_v16  ;;  %503 = vadd.xlane.f32.xlu0 %v502_v31  ;;  %v95_v32 = vpop.xlane.xlu0 %94  ;;  %v98_v35 = vpop.xlane.xlu1 %97 }
  0xb1   :  { %v142_v36 = vmul.f32 0.125, %v95_v32  ;;  %v143_v12 = vmul.f32 0.125, %v98_v35  ;;  %v464_v43 = vmul.f32 %v2597_v28, %v2597_v28  ;;  %v465_v24 = vmul.f32 %v2600_v21, %v2600_v21 }
  0xb3   :  { %v2609_v44 = vsub.f32 %v2414_v37, %v142_v36  ;;  %v2612_v25 = vsub.f32 %v2416_v38, %v143_v12  ;;  %v508_v45 = vsel %vm92_vm0, %v464_v43, 0.0  ;;  %v511_v49 = vsel %vm92_vm0, %v465_v24, 0.0 }
  0xb4   :  { %506 = vadd.xlane.f32.xlu1 %v505_v34  ;;  %509 = vadd.xlane.f32.xlu0 %v508_v45  ;;  %v101_v46 = vpop.xlane.xlu0 %100  ;;  %v104_v50 = vpop.xlane.xlu1 %103 }
  0xb5   :  { %v144_v0 = vmul.f32 0.125, %v101_v46  ;;  %v145_v14 = vmul.f32 0.125, %v104_v50  ;;  %v174_v55 = vmul.f32 %v2609_v44, %v2609_v44  ;;  %v175_v37 = vmul.f32 %v2612_v25, %v2612_v25 }
  0xb7   :  { %v2621_v56 = vsub.f32 %v2422_v41, %v144_v0  ;;  %v2624_v38 = vsub.f32 %v2424_v42, %v145_v14  ;;  %v190_v57 = vsel %vm92_vm0, %v174_v55, 0.0  ;;  %v193_v61 = vsel %vm92_vm0, %v175_v37, 0.0 }
  0xb8   :  { %512 = vadd.xlane.f32.xlu1 %v511_v49  ;;  %191 = vadd.xlane.f32.xlu0 %v190_v57  ;;  %v107_v58 = vpop.xlane.xlu0 %106  ;;  %v110_v62 = vpop.xlane.xlu1 %109 }
  0xb9   :  { %v146_v63 = vmul.f32 0.125, %v107_v58  ;;  %v147_v17 = vmul.f32 0.125, %v110_v62  ;;  %v176_v7 = vmul.f32 %v2621_v56, %v2621_v56  ;;  %v177_v41 = vmul.f32 %v2624_v38, %v2624_v38 }
  0xbb   :  { %v2633_v10 = vsub.f32 %v2436_v47, %v146_v63  ;;  %v2636_v42 = vsub.f32 %v2438_v48, %v147_v17  ;;  %v196_v11 = vsel %vm92_vm0, %v176_v7, 0.0  ;;  %v199_v23 = vsel %vm92_vm0, %v177_v41, 0.0 }
  0xbc   :  { %194 = vadd.xlane.f32.xlu1 %v193_v61  ;;  %197 = vadd.xlane.f32.xlu0 %v196_v11  ;;  %v113_v16 = vpop.xlane.xlu0 %112  ;;  %v116_v8 = vpop.xlane.xlu1 %115 }
  0xbd   :  { %v148_v27 = vmul.f32 0.125, %v113_v16  ;;  %v149_v19 = vmul.f32 0.125, %v116_v8  ;;  %v178_v31 = vmul.f32 %v2633_v10, %v2633_v10  ;;  %v179_v47 = vmul.f32 %v2636_v42, %v2636_v42 }
  0xbf   :  { %v2645_v32 = vsub.f32 %v2450_v53, %v148_v27  ;;  %v2648_v48 = vsub.f32 %v2452_v54, %v149_v19  ;;  %v202_v34 = vsel %vm92_vm0, %v178_v31, 0.0  ;;  %v205_v36 = vsel %vm92_vm0, %v179_v47, 0.0  ;;  %v619_v54 = vld [vmem:[%s3287_s6] sm:$0xf] }
  0xc0   :  { %200 = vadd.xlane.f32.xlu1 %v199_v23  ;;  %203 = vadd.xlane.f32.xlu0 %v202_v34  ;;  %v119_v35 = vpop.xlane.xlu0 %118  ;;  %v122_v12 = vpop.xlane.xlu1 %121  ;;  %v646_v37 = vsel %vm644_vm1, %v619_v54, 0 }
  0xc1   :  { %v150_v43 = vmul.f32 0.125, %v119_v35  ;;  %v151_v24 = vmul.f32 0.125, %v122_v12  ;;  %v180_v45 = vmul.f32 %v2645_v32, %v2645_v32  ;;  %v181_v53 = vmul.f32 %v2648_v48, %v2648_v48  ;;  %2023 = vmatprep.subr.msk.bf16.mxu0 %vm644_vm1, %v619_v54 }
  0xc2   :  { %1876 = vmatpush3.bf16.msra.mxu0 %v646_v37 }
  0xc3   :  { %v2660_v46 = vsub.f32 %v2464_v59, %v150_v43  ;;  %v2663_v49 = vsub.f32 %v2466_v60, %v151_v24  ;;  %v208_v50 = vsel %vm92_vm0, %v180_v45, 0.0  ;;  %v211_v14 = vsel %vm92_vm0, %v181_v53, 0.0 }
  0xc4   :  { %206 = vadd.xlane.f32.xlu1 %v205_v36  ;;  %209 = vadd.xlane.f32.xlu0 %v208_v50  ;;  %v125_v0 = vpop.xlane.xlu0 %124  ;;  %v128_v55 = vpop.xlane.xlu1 %127 }
  0xc5   :  { %v152_v57 = vmul.f32 0.125, %v125_v0  ;;  %v153_v58 = vmul.f32 0.125, %v128_v55  ;;  %v182_v59 = vmul.f32 %v2660_v46, %v2660_v46  ;;  %v183_v60 = vmul.f32 %v2663_v49, %v2663_v49 }
  0xc7   :  { %v2674_v61 = vsub.f32 %v2478_v4, %v152_v57  ;;  %v2677_v62 = vsub.f32 %v2480_v6, %v153_v58  ;;  %v214_v63 = vsel %vm92_vm0, %v182_v59, 0.0  ;;  %v217_v7 = vsel %vm92_vm0, %v183_v60, 0.0 }
  0xc8   :  { %212 = vadd.xlane.f32.xlu1 %v211_v14  ;;  %215 = vadd.xlane.f32.xlu0 %v214_v63  ;;  %v131_v17 = vpop.xlane.xlu0 %130  ;;  %v134_v41 = vpop.xlane.xlu1 %133 }
  0xc9   :  { %v154_v11 = vmul.f32 0.125, %v131_v17  ;;  %v155_v16 = vmul.f32 0.125, %v134_v41  ;;  %v184_v23 = vmul.f32 %v2674_v61, %v2674_v61  ;;  %v185_v4 = vmul.f32 %v2677_v62, %v2677_v62 }
  0xcb   :  { %v2686_v8 = vsub.f32 %v2492_v20, %v154_v11  ;;  %v2689_v6 = vsub.f32 %v2494_v22, %v155_v16  ;;  %v220_v27 = vsel %vm92_vm0, %v184_v23, 0.0  ;;  %v223_v31 = vsel %vm92_vm0, %v185_v4, 0.0 }
  0xcc   :  { %218 = vadd.xlane.f32.xlu1 %v217_v7  ;;  %221 = vadd.xlane.f32.xlu0 %v220_v27  ;;  %v137_v19 = vpop.xlane.xlu0 %136  ;;  %v140_v47 = vpop.xlane.xlu1 %139 }
  0xcd   :  { %v156_v34 = vmul.f32 0.125, %v137_v19  ;;  %v157_v35 = vmul.f32 0.125, %v140_v47  ;;  %v186_v36 = vmul.f32 %v2686_v8, %v2686_v8  ;;  %v187_v20 = vmul.f32 %v2689_v6, %v2689_v6 }
  0xcf   :  { %v2698_v12 = vsub.f32 %v2506_v29, %v156_v34  ;;  %v2701_v22 = vsub.f32 %v2508_v30, %v157_v35  ;;  %v226_v43 = vsel %vm92_vm0, %v186_v36, 0.0  ;;  %v229_v24 = vsel %vm92_vm0, %v187_v20, 0.0  ;;  %v618_v29 = vld [vmem:[%s3286_s5] sm:$0xf] }
  0xd0   :  { %224 = vadd.xlane.f32.xlu1 %v223_v31  ;;  %227 = vadd.xlane.f32.xlu0 %v226_v43  ;;  %v2716_v50 = vsel %vm644_vm1, %v618_v29, 0 }
  0xd1   :  { %v188_v45 = vmul.f32 %v2698_v12, %v2698_v12  ;;  %v189_v53 = vmul.f32 %v2701_v22, %v2701_v22  ;;  %2024 = vmatprep.subr.msk.bf16.mxu0 %vm644_vm1, %v618_v29 }
  0xd3   :  { %v232_v54 = vsel %vm92_vm0, %v188_v45, 0.0  ;;  %v235_v30 = vsel %vm92_vm0, %v189_v53, 0.0  ;;  %v2722_v53 = vld [vmem:[%s3284_s3] ss:$0 sm:$0xff] }
  0xd4   :  { %230 = vadd.xlane.f32.xlu1 %v229_v24  ;;  %233 = vadd.xlane.f32.xlu0 %v232_v54 }
  0xd8   :  { %236 = vadd.xlane.f32.xlu1 %v235_v30 }
 0x125   :  { %v468_v0 = vpop.xlane.xlu0 %467 }
 0x126   :  { %v514_v14 = vmul.f32 0.125, %v468_v0 }
 0x128   :  { %v530_v55 = vadd.f32 1e-05, %v514_v14 }
 0x129   :  { %v471_v37 = vpop.xlane.xlu1 %470  ;;  %v474_v57 = vpop.xlane.xlu0 %473 }
 0x12a   :  { %2052 = vrsqrt.f32 %v530_v55  ;;  %v515_v58 = vmul.f32 0.125, %v471_v37  ;;  %v516_v59 = vmul.f32 0.125, %v474_v57 }
 0x12c   :  { %v531_v60 = vadd.f32 1e-05, %v515_v58  ;;  %v532_v63 = vadd.f32 1e-05, %v516_v59 }
 0x12d   :  { %v477_v17 = vpop.xlane.xlu1 %476  ;;  %v480_v7 = vpop.xlane.xlu0 %479 }
 0x12e   :  { %2054 = vrsqrt.f32 %v531_v60  ;;  %v517_v41 = vmul.f32 0.125, %v477_v17  ;;  %v518_v11 = vmul.f32 0.125, %v480_v7  ;;  %v2730_v60 = vld [vmem:[%s3285_s4] ss:$0 sm:$0xff] }
 0x12f   :  { %2056 = vrsqrt.f32 %v532_v63 }
 0x130   :  { %v533_v16 = vadd.f32 1e-05, %v517_v41  ;;  %v534_v23 = vadd.f32 1e-05, %v518_v11 }
 0x131   :  { %v483_v4 = vpop.xlane.xlu1 %482  ;;  %v486_v27 = vpop.xlane.xlu0 %485 }
 0x132   :  { %2058 = vrsqrt.f32 %v533_v16  ;;  %v519_v19 = vmul.f32 0.125, %v483_v4  ;;  %v520_v31 = vmul.f32 0.125, %v486_v27 }
 0x133   :  { %2060 = vrsqrt.f32 %v534_v23 }
 0x134   :  { %v2053_v47 = vpop.eup %2052  ;;  %v535_v34 = vadd.f32 1e-05, %v519_v19  ;;  %v536_v35 = vadd.f32 1e-05, %v520_v31 }
 0x135   :  { %v489_v36 = vpop.xlane.xlu1 %488  ;;  %v492_v20 = vpop.xlane.xlu0 %491  ;;  %v562_v43 = vmul.f32 %v2053_v47, %v2515_v40 }
 0x136   :  { %2062 = vrsqrt.f32 %v535_v34  ;;  %v521_v24 = vmul.f32 0.125, %v489_v36  ;;  %v522_v45 = vmul.f32 0.125, %v492_v20 }
 0x137   :  { %2064 = vrsqrt.f32 %v536_v35  ;;  %v578_v57 = vmul.f32 %v2722_v53, %v562_v43 }
 0x138   :  { %v2055_v29 = vpop.eup %2054  ;;  %v537_v54 = vadd.f32 1e-05, %v521_v24  ;;  %v538_v30 = vadd.f32 1e-05, %v522_v45 }
 0x139   :  { %v2057_v0 = vpop.eup %2056  ;;  %v495_v14 = vpop.xlane.xlu1 %494  ;;  %v563_v37 = vmul.f32 %v2055_v29, %v2525_v51 }
 0x13a   :  { %v498_v55 = vpop.xlane.xlu0 %497  ;;  %v564_v40 = vmul.f32 %v2057_v0, %v2518_v33  ;;  %2066 = vrsqrt.f32 %v537_v54  ;;  %v523_v58 = vmul.f32 0.125, %v495_v14  ;;  %v594_v33 = vadd.f32 %v2730_v60, %v578_v57 }
 0x13b   :  { %v524_v59 = vmul.f32 0.125, %v498_v55  ;;  %2068 = vrsqrt.f32 %v538_v30  ;;  %v579_v63 = vmul.f32 %v2722_v53, %v563_v37 }
 0x13c   :  { %v2059_v17 = vpop.eup %2058  ;;  %v539_v7 = vadd.f32 1e-05, %v523_v58  ;;  %v580_v27 = vmul.f32 %v2722_v53, %v564_v40 }
 0x13d   :  { %v540_v41 = vadd.f32 1e-05, %v524_v59  ;;  %v2061_v11 = vpop.eup %2060  ;;  %v565_v51 = vmul.f32 %v2059_v17, %v2528_v52  ;;  %v501_v16 = vpop.xlane.xlu1 %500  ;;  %v595_v4 = vadd.f32 %v2730_v60, %v579_v63 }
 0x13e   :  { %v504_v23 = vpop.xlane.xlu0 %503  ;;  %v566_v19 = vmul.f32 %v2061_v11, %v2537_v2  ;;  %2070 = vrsqrt.f32 %v539_v7  ;;  %v525_v31 = vmul.f32 0.125, %v501_v16  ;;  %v596_v54 = vadd.f32 %v2730_v60, %v580_v27 }
 0x13f   :  { %v526_v47 = vmul.f32 0.125, %v504_v23  ;;  %2072 = vrsqrt.f32 %v540_v41  ;;  %v610_v34 = vpack.c.bf16 %v595_v4, %v594_v33  ;;  %v581_v35 = vmul.f32 %v2722_v53, %v565_v51 }
 0x140   :  { %v2063_v36 = vpop.eup %2062  ;;  %v541_v20 = vadd.f32 1e-05, %v525_v31  ;;  %v582_v30 = vmul.f32 %v2722_v53, %v566_v19 }
 0x141   :  { %v542_v52 = vadd.f32 1e-05, %v526_v47  ;;  %v2065_v43 = vpop.eup %2064  ;;  %v567_v24 = vmul.f32 %v2063_v36, %v2540_v5  ;;  %v507_v45 = vpop.xlane.xlu1 %506  ;;  %1877 = vmatprep.mubr.msk.bf16.mxu0 %vm92_vm0, %v610_v34  ;;  %v597_v2 = vadd.f32 %v2730_v60, %v581_v35 }
 0x142   :  { %v510_v29 = vpop.xlane.xlu0 %509  ;;  %v568_v0 = vmul.f32 %v2065_v43, %v2549_v26  ;;  %2074 = vrsqrt.f32 %v541_v20  ;;  %v527_v14 = vmul.f32 0.125, %v507_v45  ;;  %v598_v41 = vadd.f32 %v2730_v60, %v582_v30 }
 0x143   :  { %v528_v55 = vmul.f32 0.125, %v510_v29  ;;  %2076 = vrsqrt.f32 %v542_v52  ;;  %v611_v37 = vpack.c.bf16 %v597_v2, %v596_v54  ;;  %v583_v57 = vmul.f32 %v2722_v53, %v567_v24 }
 0x144   :  { %v2067_v5 = vpop.eup %2066  ;;  %v543_v40 = vadd.f32 1e-05, %v527_v14  ;;  %v584_v11 = vmul.f32 %v2722_v53, %v568_v0 }
 0x145   :  { %v544_v58 = vadd.f32 1e-05, %v528_v55  ;;  %v2069_v59 = vpop.eup %2068  ;;  %v569_v63 = vmul.f32 %v2067_v5, %v2552_v9  ;;  %v513_v17 = vpop.xlane.xlu1 %512  ;;  %1878 = vmatmul.mubr.msk.bf16.vlgmr.msra.gmra.mrb[0].mxu0 %vm92_vm0, %v611_v37  ;;  %v599_v26 = vadd.f32 %v2730_v60, %v583_v57 }
 0x146   :  { %v192_v7 = vpop.xlane.xlu0 %191  ;;  %v570_v51 = vmul.f32 %v2069_v59, %v2561_v39  ;;  %2078 = vrsqrt.f32 %v543_v40  ;;  %v529_v16 = vmul.f32 0.125, %v513_v17  ;;  %1894 = vmatpush3.bf16.msra.mxu0 %v2716_v50  ;;  %v600_v39 = vadd.f32 %v2730_v60, %v584_v11 }
 0x147   :  { %v238_v23 = vmul.f32 0.125, %v192_v7  ;;  %2080 = vrsqrt.f32 %v544_v58  ;;  %v612_v33 = vpack.c.bf16 %v599_v26, %v598_v41  ;;  %v585_v9 = vmul.f32 %v2722_v53, %v569_v63 }
 0x148   :  { %v2071_v4 = vpop.eup %2070  ;;  %v545_v27 = vadd.f32 1e-05, %v529_v16  ;;  %v586_v50 = vmul.f32 %v2722_v53, %v570_v51 }
 0x149   :  { %v254_v19 = vadd.f32 1e-05, %v238_v23  ;;  %v2073_v31 = vpop.eup %2072  ;;  %v571_v47 = vmul.f32 %v2071_v4, %v2564_v13  ;;  %v195_v34 = vpop.xlane.xlu1 %194  ;;  %1881 = vmatprep.mubr.msk.bf16.mxu0 %vm92_vm0, %v612_v33  ;;  %v601_v36 = vadd.f32 %v2730_v60, %v585_v9 }
 0x14a   :  { %v198_v35 = vpop.xlane.xlu0 %197  ;;  %v572_v20 = vmul.f32 %v2073_v31, %v2573_v1  ;;  %2082 = vrsqrt.f32 %v545_v27  ;;  %v239_v52 = vmul.f32 0.125, %v195_v34  ;;  %v602_v55 = vadd.f32 %v2730_v60, %v586_v50 }
 0x14b   :  { %v240_v43 = vmul.f32 0.125, %v198_v35  ;;  %2084 = vrsqrt.f32 %v254_v19  ;;  %v613_v24 = vpack.c.bf16 %v601_v36, %v600_v39  ;;  %v587_v45 = vmul.f32 %v2722_v53, %v571_v47 }
 0x14c   :  { %v2075_v13 = vpop.eup %2074  ;;  %v255_v29 = vadd.f32 1e-05, %v239_v52  ;;  %v588_v37 = vmul.f32 %v2722_v53, %v572_v20 }
 0x14d   :  { %v256_v54 = vadd.f32 1e-05, %v240_v43  ;;  %v2077_v2 = vpop.eup %2076  ;;  %v573_v30 = vmul.f32 %v2075_v13, %v2576_v15  ;;  %v201_v0 = vpop.xlane.xlu1 %200  ;;  %1882 = vmatmul.mubr.msk.bf16.gmra.mrb[4].mxu0 %vm92_vm0, %v613_v24  ;;  %v603_v1 = vadd.f32 %v2730_v60, %v587_v45 }
 0x14e   :  { %v204_v14 = vpop.xlane.xlu0 %203  ;;  %v574_v57 = vmul.f32 %v2077_v2, %v2585_v3  ;;  %2086 = vrsqrt.f32 %v255_v29  ;;  %v241_v5 = vmul.f32 0.125, %v201_v0  ;;  %v604_v51 = vadd.f32 %v2730_v60, %v588_v37 }
 0x14f   :  { %v242_v40 = vmul.f32 0.125, %v204_v14  ;;  %2088 = vrsqrt.f32 %v256_v54  ;;  %v614_v58 = vpack.c.bf16 %v603_v1, %v602_v55  ;;  %v589_v59 = vmul.f32 %v2722_v53, %v573_v30 }
 0x150   :  { %v2079_v15 = vpop.eup %2078  ;;  %v257_v63 = vadd.f32 1e-05, %v241_v5  ;;  %v590_v16 = vmul.f32 %v2722_v53, %v574_v57 }
 0x151   :  { %v258_v17 = vadd.f32 1e-05, %v242_v40  ;;  %v2081_v7 = vpop.eup %2080  ;;  %v575_v41 = vmul.f32 %v2079_v15, %v2588_v18  ;;  %v207_v26 = vpop.xlane.xlu1 %206  ;;  %1885 = vmatprep.mubr.msk.bf16.mxu0 %vm92_vm0, %v614_v58  ;;  %v605_v3 = vadd.f32 %v2730_v60, %v589_v59 }
 0x152   :  { %v210_v11 = vpop.xlane.xlu0 %209  ;;  %v576_v23 = vmul.f32 %v2081_v7, %v2597_v28  ;;  %2090 = vrsqrt.f32 %v257_v63  ;;  %v243_v33 = vmul.f32 0.125, %v207_v26  ;;  %v606_v36 = vadd.f32 %v2730_v60, %v590_v16 }
 0x153   :  { %v244_v9 = vmul.f32 0.125, %v210_v11  ;;  %2092 = vrsqrt.f32 %v258_v17  ;;  %v615_v4 = vpack.c.bf16 %v605_v3, %v604_v51  ;;  %v591_v27 = vmul.f32 %v2722_v53, %v575_v41 }
 0x154   :  { %v2083_v18 = vpop.eup %2082  ;;  %v259_v19 = vadd.f32 1e-05, %v243_v33  ;;  %v592_v50 = vmul.f32 %v2722_v53, %v576_v23 }
 0x155   :  { %v260_v31 = vadd.f32 1e-05, %v244_v9  ;;  %v2085_v47 = vpop.eup %2084  ;;  %v577_v34 = vmul.f32 %v2083_v18, %v2600_v21  ;;  %v213_v35 = vpop.xlane.xlu1 %212  ;;  %1886 = vmatmul.mubr.msk.bf16.gmra.mrb[8].mxu0 %vm92_vm0, %v615_v4  ;;  %v607_v28 = vadd.f32 %v2730_v60, %v591_v27 }
 0x156   :  { %v216_v39 = vpop.xlane.xlu0 %215  ;;  %v286_v20 = vmul.f32 %v2085_v47, %v2609_v44  ;;  %2094 = vrsqrt.f32 %v259_v19  ;;  %v245_v52 = vmul.f32 0.125, %v213_v35  ;;  %v608_v14 = vadd.f32 %v2730_v60, %v592_v50 }
 0x157   :  { %v246_v43 = vmul.f32 0.125, %v216_v39  ;;  %2096 = vrsqrt.f32 %v260_v31  ;;  %v616_v24 = vpack.c.bf16 %v607_v28, %v606_v36  ;;  %v593_v45 = vmul.f32 %v2722_v53, %v577_v34 }
 0x158   :  { %v2087_v21 = vpop.eup %2086  ;;  %v261_v13 = vadd.f32 1e-05, %v245_v52  ;;  %v308_v55 = vmul.f32 %v2722_v53, %v286_v20 }
 0x159   :  { %v262_v29 = vadd.f32 1e-05, %v246_v43  ;;  %v2089_v54 = vpop.eup %2088  ;;  %v287_v2 = vmul.f32 %v2087_v21, %v2612_v25  ;;  %v219_v30 = vpop.xlane.xlu1 %218  ;;  %1889 = vmatprep.mubr.msk.bf16.mxu0 %vm92_vm0, %v616_v24  ;;  %v609_v44 = vadd.f32 %v2730_v60, %v593_v45 }
 0x15a   :  { %v222_v0 = vpop.xlane.xlu0 %221  ;;  %v288_v1 = vmul.f32 %v2089_v54, %v2621_v56  ;;  %2098 = vrsqrt.f32 %v261_v13  ;;  %v247_v37 = vmul.f32 0.125, %v219_v30  ;;  %v330_v56 = vadd.f32 %v2730_v60, %v308_v55 }
 0x15b   :  { %v248_v57 = vmul.f32 0.125, %v222_v0  ;;  %2100 = vrsqrt.f32 %v262_v29  ;;  %v617_v5 = vpack.c.bf16 %v609_v44, %v608_v14  ;;  %v309_v40 = vmul.f32 %v2722_v53, %v287_v2 }
 0x15c   :  { %v2091_v25 = vpop.eup %2090  ;;  %v310_v58 = vmul.f32 %v2722_v53, %v288_v1  ;;  %v263_v59 = vadd.f32 1e-05, %v247_v37 }
 0x15d   :  { %v264_v15 = vadd.f32 1e-05, %v248_v57  ;;  %v2093_v63 = vpop.eup %2092  ;;  %v289_v17 = vmul.f32 %v2091_v25, %v2624_v38  ;;  %v225_v7 = vpop.xlane.xlu1 %224  ;;  %1890 = vmatmul.mubr.msk.bf16.gmra.mrb[12].mxu0 %vm92_vm0, %v617_v5  ;;  %v331_v26 = vadd.f32 %v2730_v60, %v309_v40 }
 0x15e   :  { %v228_v41 = vpop.xlane.xlu0 %227  ;;  %v290_v11 = vmul.f32 %v2093_v63, %v2633_v10  ;;  %2102 = vrsqrt.f32 %v263_v59  ;;  %v249_v51 = vmul.f32 0.125, %v225_v7  ;;  %v332_v38 = vadd.f32 %v2730_v60, %v310_v58 }
 0x15f   :  { %v311_v3 = vmul.f32 %v2722_v53, %v289_v17  ;;  %2104 = vrsqrt.f32 %v264_v15  ;;  %v250_v16 = vmul.f32 0.125, %v228_v41  ;;  %v346_v23 = vpack.c.bf16 %v331_v26, %v330_v56 }
 0x160   :  { %v2095_v33 = vpop.eup %2094  ;;  %v265_v9 = vadd.f32 1e-05, %v249_v51  ;;  %v312_v10 = vmul.f32 %v2722_v53, %v290_v11 }
 0x161   :  { %v2097_v4 = vpop.eup %2096  ;;  %v333_v27 = vadd.f32 %v2730_v60, %v311_v3  ;;  %v291_v18 = vmul.f32 %v2095_v33, %v2636_v42  ;;  %v266_v19 = vadd.f32 1e-05, %v250_v16  ;;  %v231_v31 = vpop.xlane.xlu1 %230  ;;  %1895 = vmatprep.mubr.msk.bf16.mxu0 %vm92_vm0, %v346_v23 }
 0x162   :  { %v234_v47 = vpop.xlane.xlu0 %233  ;;  %v292_v34 = vmul.f32 %v2097_v4, %v2645_v32  ;;  %2106 = vrsqrt.f32 %v265_v9  ;;  %v251_v35 = vmul.f32 0.125, %v231_v31  ;;  %v334_v45 = vadd.f32 %v2730_v60, %v312_v10  ;;  %v2033_v31 = vld [vmem:[%s3289_s8 + $0x28] sm:$0xff]   ;;  %v2035_v10 = vld [vmem:[%s3289_s8 + $0x38] sm:$0xff]  }
 0x163   :  { %v252_v39 = vmul.f32 0.125, %v234_v47  ;;  %2108 = vrsqrt.f32 %v266_v19  ;;  %v347_v36 = vpack.c.bf16 %v333_v27, %v332_v38  ;;  %v313_v28 = vmul.f32 %v2722_v53, %v291_v18  ;;  %v2029_v18 = vld [vmem:[%s3289_s8 + $0x8] sm:$0xff]   ;;  %v2032_v19 = vld [vmem:[%s3289_s8 + $0x20] sm:$0xff]   ;;  %v2034_v47 = vld [vmem:[%s3289_s8 + $0x30] sm:$0xff]  }
 0x164   :  { %v2099_v50 = vpop.eup %2098  ;;  %v267_v20 = vadd.f32 1e-05, %v251_v35  ;;  %v314_v21 = vmul.f32 %v2722_v53, %v292_v34  ;;  %v2868_v34 = vld [vmem:[%s3291_s10] sm:$0xff]  }
 0x165   :  { %v268_v52 = vadd.f32 1e-05, %v252_v39  ;;  %v2101_v42 = vpop.eup %2100  ;;  %v293_v43 = vmul.f32 %v2099_v50, %v2648_v48  ;;  %v237_v24 = vpop.xlane.xlu1 %236  ;;  %1896 = vmatmul.mubr.msk.bf16.vlgmr.msra.gmra.mrb[0].mxu0 %vm92_vm0, %v347_v36  ;;  %v335_v32 = vadd.f32 %v2730_v60, %v313_v28  ;;  %v2874_v35 = vld [vmem:[%s3288_s7] ss:$0 sm:$0xff] }
 0x166   :  { %v294_v13 = vmul.f32 %v2101_v42, %v2660_v46  ;;  %2110 = vrsqrt.f32 %v267_v20  ;;  %v253_v29 = vmul.f32 0.125, %v237_v24  ;;  %v336_v44 = vadd.f32 %v2730_v60, %v314_v21 }
 0x167   :  { %2112 = vrsqrt.f32 %v268_v52  ;;  %v348_v54 = vpack.c.bf16 %v335_v32, %v334_v45  ;;  %v315_v2 = vmul.f32 %v2722_v53, %v293_v43 }
 0x168   :  { %v2103_v30 = vpop.eup %2102  ;;  %v269_v0 = vadd.f32 1e-05, %v253_v29  ;;  %v316_v1 = vmul.f32 %v2722_v53, %v294_v13 }
 0x169   :  { %v2105_v48 = vpop.eup %2104  ;;  %v295_v14 = vmul.f32 %v2103_v30, %v2663_v49  ;;  %1899 = vmatprep.mubr.msk.bf16.mxu0 %vm92_vm0, %v348_v54  ;;  %v337_v55 = vadd.f32 %v2730_v60, %v315_v2 }
 0x16a   :  { %v296_v46 = vmul.f32 %v2105_v48, %v2674_v61  ;;  %2114 = vrsqrt.f32 %v269_v0  ;;  %v338_v49 = vadd.f32 %v2730_v60, %v316_v1 }
 0x16b   :  { %v349_v37 = vpack.c.bf16 %v337_v55, %v336_v44  ;;  %v317_v57 = vmul.f32 %v2722_v53, %v295_v14 }
 0x16c   :  { %v2107_v5 = vpop.eup %2106  ;;  %v318_v59 = vmul.f32 %v2722_v53, %v296_v46 }
 0x16d   :  { %v2109_v40 = vpop.eup %2108  ;;  %v297_v25 = vmul.f32 %v2107_v5, %v2677_v62  ;;  %1900 = vmatmul.mubr.msk.bf16.gmra.mrb[4].mxu0 %vm92_vm0, %v349_v37  ;;  %v339_v58 = vadd.f32 %v2730_v60, %v317_v57 }
 0x16e   :  { %v298_v15 = vmul.f32 %v2109_v40, %v2686_v8  ;;  %v340_v62 = vadd.f32 %v2730_v60, %v318_v59 }
 0x16f   :  { %v350_v63 = vpack.c.bf16 %v339_v58, %v338_v49  ;;  %v319_v61 = vmul.f32 %v2722_v53, %v297_v25 }
 0x170   :  { %v2111_v17 = vpop.eup %2110  ;;  %v320_v26 = vmul.f32 %v2722_v53, %v298_v15 }
 0x171   :  { %v2113_v7 = vpop.eup %2112  ;;  %v299_v41 = vmul.f32 %v2111_v17, %v2689_v6  ;;  %1903 = vmatprep.mubr.msk.bf16.mxu0 %vm92_vm0, %v350_v63  ;;  %v341_v56 = vadd.f32 %v2730_v60, %v319_v61 }
 0x172   :  { %v300_v11 = vmul.f32 %v2113_v7, %v2698_v12  ;;  %v342_v6 = vadd.f32 %v2730_v60, %v320_v26 }
 0x173   :  { %v351_v51 = vpack.c.bf16 %v341_v56, %v340_v62  ;;  %v321_v8 = vmul.f32 %v2722_v53, %v299_v41 }
 0x174   :  { %v2115_v3 = vpop.eup %2114  ;;  %v322_v33 = vmul.f32 %v2722_v53, %v300_v11 }
 0x175   :  { %v301_v16 = vmul.f32 %v2115_v3, %v2701_v22  ;;  %1904 = vmatmul.mubr.msk.bf16.gmra.mrb[8].mxu0 %vm92_vm0, %v351_v51  ;;  %v343_v23 = vadd.f32 %v2730_v60, %v321_v8  ;;  %v2028_v22 = vld [vmem:[%s3289_s8] sm:$0xff]  }
 0x176   :  { %v344_v12 = vadd.f32 %v2730_v60, %v322_v33  ;;  %1911 = vmatprep.subr.bf16.mxu1 %v2028_v22 }
 0x177   :  { %v352_v38 = vpack.c.bf16 %v343_v23, %v342_v6  ;;  %v323_v9 = vmul.f32 %v2722_v53, %v301_v16  ;;  %1912 = vmatpush3.bf16.msra.mxu1 %v2028_v22  ;;  %v2030_v53 = vld [vmem:[%s3289_s8 + $0x10] sm:$0xff]  }
 0x178   :  { %1913 = vmatprep.subr.bf16.mxu1 %v2029_v18 }
 0x179   :  { %1907 = vmatprep.mubr.msk.bf16.mxu0 %vm92_vm0, %v352_v38  ;;  %v345_v4 = vadd.f32 %v2730_v60, %v323_v9  ;;  %v2031_v60 = vld [vmem:[%s3289_s8 + $0x18] sm:$0xff]  }
 0x17b   :  { %v353_v27 = vpack.c.bf16 %v345_v4, %v344_v12  ;;  %1914 = vmatpush3.bf16.msra.mxu1 %v2029_v18 }
 0x17c   :  { %1915 = vmatprep.subr.bf16.mxu1 %v2030_v53 }
 0x17d   :  { %1908 = vmatmul.mubr.msk.bf16.gmra.mrb[12].mxu0 %vm92_vm0, %v353_v27 }
 0x17f   :  { %1916 = vmatpush3.bf16.msra.mxu1 %v2030_v53 }
 0x180   :  { %1917 = vmatprep.subr.bf16.mxu1 %v2031_v60 }
 0x183   :  { %1918 = vmatpush3.bf16.msra.mxu1 %v2031_v60 }
 0x184   :  { %1919 = vmatprep.subr.bf16.mxu1 %v2032_v19 }
 0x187   :  { %1920 = vmatpush3.bf16.msra.mxu1 %v2032_v19 }
 0x188   :  { %1921 = vmatprep.subr.bf16.mxu1 %v2033_v31 }
 0x18b   :  { %1922 = vmatpush3.bf16.msra.mxu1 %v2033_v31 }
 0x18c   :  { %1923 = vmatprep.subr.bf16.mxu1 %v2034_v47 }
 0x18f   :  { %1924 = vmatpush3.bf16.msra.mxu1 %v2034_v47 }
 0x190   :  { %1925 = vmatprep.subr.bf16.mxu1 %v2035_v10 }
 0x193   :  { %1926 = vmatpush3.bf16.msra.mxu1 %v2035_v10 }
 0x194   :  { %1943 = vmatprep.subr.bf16.mxu1 %v2868_v34 }
 0x238   :  { %v1897_v39 = vpop.f32.mrb[0].mxu0 }
 0x239   :  { %v2877_v36 = vadd.f32 %v1897_v39, %v2874_v35  ;;  %v806_v28 = vpop.f32.mrb[1].mxu0 }
 0x23a   :  { %v2880_v50 = vadd.f32 %v2874_v35, %v806_v28  ;;  %v1898_v20 = vpop.f32.mrb[2].mxu0 }
 0x23b   :  { %v894_v52 = vmul.f32 %v2877_v36, %v2877_v36  ;;  %v2885_v42 = vadd.f32 %v1898_v20, %v2874_v35  ;;  %v809_v43 = vpop.f32.mrb[3].mxu0 }
 0x23c   :  { %v892_v24 = vmul.f32 %v2880_v50, %v2880_v50  ;;  %v2890_v45 = vadd.f32 %v2874_v35, %v809_v43 }
 0x23d   :  { %v910_v32 = vmul.f32 %v894_v52, %v2877_v36  ;;  %v895_v21 = vmul.f32 %v2885_v42, %v2885_v42 }
 0x23e   :  { %v908_v13 = vmul.f32 %v892_v24, %v2880_v50  ;;  %v893_v29 = vmul.f32 %v2890_v45, %v2890_v45 }
 0x23f   :  { %v926_v54 = vmul.f32 0.044715, %v910_v32  ;;  %v911_v2 = vmul.f32 %v895_v21, %v2885_v42 }
 0x240   :  { %v924_v30 = vmul.f32 0.044715, %v908_v13  ;;  %v909_v0 = vmul.f32 %v893_v29, %v2890_v45  ;;  %v1901_v48 = vpop.f32.mrb[4].mxu0 }
 0x241   :  { %v942_v14 = vadd.f32 %v926_v54, %v2877_v36  ;;  %v927_v44 = vmul.f32 0.044715, %v911_v2  ;;  %v2902_v55 = vadd.f32 %v1901_v48, %v2874_v35  ;;  %v822_v1 = vpop.f32.mrb[5].mxu0 }
 0x242   :  { %v925_v46 = vmul.f32 0.044715, %v909_v0  ;;  %v2905_v37 = vadd.f32 %v2874_v35, %v822_v1  ;;  %v1902_v57 = vpop.f32.mrb[6].mxu0  ;;  %v940_v5 = vadd.f32 %v924_v30, %v2880_v50 }
 0x243   :  { %v958_v40 = vmul.f32 0.7978846, %v942_v14  ;;  %v943_v25 = vadd.f32 %v927_v44, %v2885_v42  ;;  %v898_v49 = vmul.f32 %v2902_v55, %v2902_v55  ;;  %v2912_v58 = vadd.f32 %v1902_v57, %v2874_v35  ;;  %v825_v59 = vpop.f32.mrb[7].mxu0 }
 0x244   :  { %v896_v15 = vmul.f32 %v2905_v37, %v2905_v37  ;;  %v2917_v63 = vadd.f32 %v2874_v35, %v825_v59  ;;  %v941_v61 = vadd.f32 %v925_v46, %v2890_v45  ;;  %v956_v17 = vmul.f32 0.7978846, %v940_v5 }
 0x245   :  { %2116 = vtanh.f32 %v958_v40  ;;  %v959_v7 = vmul.f32 0.7978846, %v943_v25  ;;  %v914_v41 = vmul.f32 %v898_v49, %v2902_v55  ;;  %v899_v62 = vmul.f32 %v2912_v58, %v2912_v58 }
 0x246   :  { %v912_v56 = vmul.f32 %v896_v15, %v2905_v37  ;;  %v897_v26 = vmul.f32 %v2917_v63, %v2917_v63  ;;  %v957_v11 = vmul.f32 0.7978846, %v941_v61  ;;  %2118 = vtanh.f32 %v956_v17 }
 0x247   :  { %2120 = vtanh.f32 %v959_v7  ;;  %v930_v51 = vmul.f32 0.044715, %v914_v41  ;;  %v915_v8 = vmul.f32 %v899_v62, %v2912_v58 }
 0x248   :  { %v928_v3 = vmul.f32 0.044715, %v912_v56  ;;  %v913_v16 = vmul.f32 %v897_v26, %v2917_v63  ;;  %v1905_v6 = vpop.f32.mrb[8].mxu0  ;;  %2122 = vtanh.f32 %v957_v11 }
 0x249   :  { %v946_v23 = vadd.f32 %v930_v51, %v2902_v55  ;;  %v931_v33 = vmul.f32 0.044715, %v915_v8  ;;  %v2930_v38 = vadd.f32 %v1905_v6, %v2874_v35  ;;  %v838_v9 = vpop.f32.mrb[9].mxu0 }
 0x24a   :  { %v944_v12 = vadd.f32 %v928_v3, %v2905_v37  ;;  %v929_v4 = vmul.f32 0.044715, %v913_v16  ;;  %v2934_v27 = vadd.f32 %v2874_v35, %v838_v9  ;;  %v1906_v22 = vpop.f32.mrb[10].mxu0 }
 0x24b   :  { %v962_v18 = vmul.f32 0.7978846, %v946_v23  ;;  %v947_v53 = vadd.f32 %v931_v33, %v2912_v58  ;;  %v902_v60 = vmul.f32 %v2930_v38, %v2930_v38  ;;  %v2940_v19 = vadd.f32 %v1906_v22, %v2874_v35  ;;  %v841_v31 = vpop.f32.mrb[11].mxu0 }
 0x24c   :  { %v960_v47 = vmul.f32 0.7978846, %v944_v12  ;;  %v945_v10 = vadd.f32 %v929_v4, %v2917_v63  ;;  %v900_v39 = vmul.f32 %v2934_v27, %v2934_v27  ;;  %v2946_v28 = vadd.f32 %v2874_v35, %v841_v31 }
 0x24d   :  { %2124 = vtanh.f32 %v962_v18  ;;  %v963_v20 = vmul.f32 0.7978846, %v947_v53  ;;  %v918_v52 = vmul.f32 %v902_v60, %v2930_v38  ;;  %v903_v43 = vmul.f32 %v2940_v19, %v2940_v19 }
 0x24e   :  { %2126 = vtanh.f32 %v960_v47  ;;  %v961_v24 = vmul.f32 0.7978846, %v945_v10  ;;  %v916_v32 = vmul.f32 %v900_v39, %v2934_v27  ;;  %v901_v21 = vmul.f32 %v2946_v28, %v2946_v28 }
 0x24f   :  { %v2117_v13 = vpop.eup %2116  ;;  %2128 = vtanh.f32 %v963_v20  ;;  %v934_v29 = vmul.f32 0.044715, %v918_v52  ;;  %v919_v54 = vmul.f32 %v903_v43, %v2940_v19 }
 0x250   :  { %v2119_v2 = vpop.eup %2118  ;;  %2130 = vtanh.f32 %v961_v24  ;;  %v932_v30 = vmul.f32 0.044715, %v916_v32  ;;  %v917_v0 = vmul.f32 %v901_v21, %v2946_v28  ;;  %v1909_v48 = vpop.f32.mrb[12].mxu0  ;;  %v990_v14 = vadd.f32 1.0, %v2117_v13 }
 0x251   :  { %v2121_v44 = vpop.eup %2120  ;;  %v950_v1 = vadd.f32 %v934_v29, %v2930_v38  ;;  %v935_v46 = vmul.f32 0.044715, %v919_v54  ;;  %v2958_v57 = vadd.f32 %v1909_v48, %v2874_v35  ;;  %v854_v5 = vpop.f32.mrb[13].mxu0  ;;  %v988_v40 = vadd.f32 1.0, %v2119_v2 }
 0x252   :  { %v948_v25 = vadd.f32 %v932_v30, %v2934_v27  ;;  %v933_v49 = vmul.f32 0.044715, %v917_v0  ;;  %v2962_v59 = vadd.f32 %v2874_v35, %v854_v5  ;;  %v1910_v15 = vpop.f32.mrb[14].mxu0  ;;  %v991_v61 = vadd.f32 1.0, %v2121_v44  ;;  %v2123_v26 = vpop.eup %2122 }
 0x253   :  { %v966_v17 = vmul.f32 0.7978846, %v950_v1  ;;  %v951_v7 = vadd.f32 %v935_v46, %v2940_v19  ;;  %v906_v41 = vmul.f32 %v2958_v57, %v2958_v57  ;;  %v2968_v62 = vadd.f32 %v1910_v15, %v2874_v35  ;;  %v857_v56 = vpop.f32.mrb[15].mxu0 }
 0x254   :  { %v964_v11 = vmul.f32 0.7978846, %v948_v25  ;;  %v949_v51 = vadd.f32 %v933_v49, %v2946_v28  ;;  %v904_v8 = vmul.f32 %v2962_v59, %v2962_v59  ;;  %v2974_v3 = vadd.f32 %v2874_v35, %v857_v56 }
 0x255   :  { %2132 = vtanh.f32 %v966_v17  ;;  %v967_v16 = vmul.f32 0.7978846, %v951_v7  ;;  %v922_v6 = vmul.f32 %v906_v41, %v2958_v57  ;;  %v907_v23 = vmul.f32 %v2968_v62, %v2968_v62 }
 0x256   :  { %2134 = vtanh.f32 %v964_v11  ;;  %v965_v33 = vmul.f32 0.7978846, %v949_v51  ;;  %v920_v9 = vmul.f32 %v904_v8, %v2962_v59  ;;  %v905_v12 = vmul.f32 %v2974_v3, %v2974_v3 }
 0x257   :  { %v2125_v4 = vpop.eup %2124  ;;  %2136 = vtanh.f32 %v967_v16  ;;  %v938_v22 = vmul.f32 0.044715, %v922_v6  ;;  %v923_v35 = vmul.f32 %v907_v23, %v2968_v62  ;;  %v989_v18 = vadd.f32 1.0, %v2123_v26 }
 0x258   :  { %v2127_v53 = vpop.eup %2126  ;;  %2138 = vtanh.f32 %v965_v33  ;;  %v936_v60 = vmul.f32 0.044715, %v920_v9  ;;  %v921_v31 = vmul.f32 %v905_v12, %v2974_v3  ;;  %v1004_v47 = vmul.f32 0.5, %v988_v40  ;;  %v2038_v33 = vld [vmem:[%s3291_s10 + $0x10] sm:$0xff]  }
 0x259   :  { %v2129_v10 = vpop.eup %2128  ;;  %v954_v39 = vadd.f32 %v938_v22, %v2958_v57  ;;  %v939_v20 = vmul.f32 0.044715, %v923_v35  ;;  %v1005_v52 = vmul.f32 0.5, %v989_v18  ;;  %v1006_v43 = vmul.f32 0.5, %v990_v14 }
 0x25a   :  { %v2131_v24 = vpop.eup %2130  ;;  %v952_v32 = vadd.f32 %v936_v60, %v2962_v59  ;;  %v937_v21 = vmul.f32 0.044715, %v921_v31  ;;  %v1020_v13 = vmul.f32 %v1004_v47, %v2880_v50  ;;  %v1007_v29 = vmul.f32 0.5, %v991_v61  ;;  %v2039_v60 = vld [vmem:[%s3291_s10 + $0x18] sm:$0xff]  }
 0x25b   :  { %v970_v54 = vmul.f32 0.7978846, %v954_v39  ;;  %v955_v2 = vadd.f32 %v939_v20, %v2968_v62  ;;  %v1021_v30 = vmul.f32 %v1005_v52, %v2890_v45  ;;  %v1022_v0 = vmul.f32 %v1006_v43, %v2877_v36  ;;  %v2037_v45 = vld [vmem:[%s3291_s10 + $0x8] sm:$0xff]  }
 0x25c   :  { %v968_v48 = vmul.f32 0.7978846, %v952_v32  ;;  %v953_v44 = vadd.f32 %v937_v21, %v2974_v3  ;;  %v1023_v1 = vmul.f32 %v1007_v29, %v2885_v42  ;;  %v992_v14 = vadd.f32 1.0, %v2127_v53  ;;  %v2040_v32 = vld [vmem:[%s3291_s10 + $0x20] sm:$0xff]  }
 0x25d   :  { %2140 = vtanh.f32 %v970_v54  ;;  %v971_v46 = vmul.f32 0.7978846, %v955_v2  ;;  %v1036_v5 = vpack.c.bf16 %v1021_v30, %v1020_v13  ;;  %v993_v40 = vadd.f32 1.0, %v2131_v24  ;;  %v2041_v2 = vld [vmem:[%s3291_s10 + $0x28] sm:$0xff]  }
 0x25e   :  { %2142 = vtanh.f32 %v968_v48  ;;  %v969_v50 = vmul.f32 0.7978846, %v953_v44  ;;  %v1037_v25 = vpack.c.bf16 %v1023_v1, %v1022_v0  ;;  %v1008_v49 = vmul.f32 0.5, %v992_v14 }
 0x25f   :  { %v2133_v15 = vpop.eup %2132  ;;  %2144 = vtanh.f32 %v971_v46  ;;  %1927 = vmatprep.mubr.bf16.mxu1 %v1036_v5  ;;  %v1009_v36 = vmul.f32 0.5, %v993_v40  ;;  %v994_v61 = vadd.f32 1.0, %v2125_v4  ;;  %v995_v17 = vadd.f32 1.0, %v2129_v10 }
 0x260   :  { %v2135_v42 = vpop.eup %2134  ;;  %2146 = vtanh.f32 %v969_v50  ;;  %1928 = vmatmul.mubr.bf16.vlgmr.msra.gmra.mrb[0].mxu1 %v1037_v25  ;;  %v1024_v7 = vmul.f32 %v1008_v49, %v2905_v37  ;;  %v998_v41 = vadd.f32 1.0, %v2133_v15 }
 0x261   :  { %v2137_v56 = vpop.eup %2136  ;;  %v1025_v26 = vmul.f32 %v1009_v36, %v2917_v63  ;;  %v1010_v11 = vmul.f32 0.5, %v994_v61  ;;  %v1011_v51 = vmul.f32 0.5, %v995_v17  ;;  %v996_v8 = vadd.f32 1.0, %v2135_v42  ;;  %1944 = vmatpush3.bf16.msra.mxu1 %v2868_v34 }
 0x262   :  { %v2139_v16 = vpop.eup %2138  ;;  %v999_v6 = vadd.f32 1.0, %v2137_v56  ;;  %v1014_v23 = vmul.f32 0.5, %v998_v41  ;;  %1945 = vmatprep.subr.bf16.mxu1 %v2037_v45 }
 0x263   :  { %v1038_v9 = vpack.c.bf16 %v1025_v26, %v1024_v7  ;;  %v1026_v37 = vmul.f32 %v1010_v11, %v2902_v55  ;;  %v1027_v12 = vmul.f32 %v1011_v51, %v2912_v58  ;;  %v997_v4 = vadd.f32 1.0, %v2139_v16 }
 0x264   :  { %v1012_v63 = vmul.f32 0.5, %v996_v8  ;;  %v1015_v22 = vmul.f32 0.5, %v999_v6  ;;  %v1030_v34 = vmul.f32 %v1014_v23, %v2930_v38 }
 0x265   :  { %1931 = vmatprep.mubr.bf16.mxu1 %v1038_v9  ;;  %v1039_v35 = vpack.c.bf16 %v1027_v12, %v1026_v37  ;;  %v1013_v18 = vmul.f32 0.5, %v997_v4  ;;  %1946 = vmatpush3.bf16.msra.mxu1 %v2037_v45 }
 0x266   :  { %v1031_v53 = vmul.f32 %v1015_v22, %v2940_v19  ;;  %1947 = vmatprep.subr.bf16.mxu1 %v2038_v33  ;;  %v1028_v55 = vmul.f32 %v1012_v63, %v2934_v27 }
 0x267   :  { %v2141_v31 = vpop.eup %2140  ;;  %v1029_v58 = vmul.f32 %v1013_v18, %v2946_v28 }
 0x268   :  { %v2143_v47 = vpop.eup %2142  ;;  %1932 = vmatmul.mubr.bf16.gmra.mrb[4].mxu1 %v1039_v35  ;;  %v1041_v10 = vpack.c.bf16 %v1031_v53, %v1030_v34  ;;  %v1002_v39 = vadd.f32 1.0, %v2141_v31 }
 0x269   :  { %v2145_v20 = vpop.eup %2144  ;;  %v1040_v52 = vpack.c.bf16 %v1029_v58, %v1028_v55  ;;  %v1000_v43 = vadd.f32 1.0, %v2143_v47  ;;  %1948 = vmatpush3.bf16.msra.mxu1 %v2038_v33  ;;  %v2044_v47 = vld [vmem:[%s3293_s12] sm:$0xff]  }
 0x26a   :  { %v2147_v38 = vpop.eup %2146  ;;  %v1003_v19 = vadd.f32 1.0, %v2145_v20  ;;  %v1018_v24 = vmul.f32 0.5, %v1002_v39  ;;  %1949 = vmatprep.subr.bf16.mxu1 %v2039_v60  ;;  %1975 = vmatprep.subr.bf16.mxu0 %v2044_v47  ;;  %v2046_v39 = vld [vmem:[%s3293_s12 + $0x10] sm:$0xff]   ;;  %v2047_v20 = vld [vmem:[%s3293_s12 + $0x18] sm:$0xff]  }
 0x26b   :  { %1935 = vmatprep.mubr.bf16.mxu1 %v1040_v52  ;;  %v1001_v27 = vadd.f32 1.0, %v2147_v38  ;;  %v1016_v21 = vmul.f32 0.5, %v1000_v43  ;;  %1976 = vmatpush3.bf16.msra.mxu0 %v2044_v47  ;;  %v2048_v52 = vld [vmem:[%s3293_s12 + $0x20] sm:$0xff]   ;;  %v2049_v43 = vld [vmem:[%s3293_s12 + $0x28] sm:$0xff]   ;;  %v2050_v38 = vld [vmem:[%s3293_s12 + $0x30] sm:$0xff]  }
 0x26c   :  { %v1019_v28 = vmul.f32 0.5, %v1003_v19  ;;  %v1034_v29 = vmul.f32 %v1018_v24, %v2958_v57  ;;  %v2042_v57 = vld [vmem:[%s3291_s10 + $0x30] sm:$0xff]   ;;  %v2051_v19 = vld [vmem:[%s3293_s12 + $0x38] sm:$0xff]   ;;  %v3072_v24 = vld [vmem:[%s3292_s11] ss:$0 sm:$0xff]  ;;  %s2204_s11 = smov [#allocation2]  }
 0x26d   :  { %v1017_v13 = vmul.f32 0.5, %v1001_v27  ;;  %1950 = vmatpush3.bf16.msra.mxu1 %v2039_v60  ;;  %v1032_v30 = vmul.f32 %v1016_v21, %v2962_v59  ;;  %v2043_v59 = vld [vmem:[%s3291_s10 + $0x38] sm:$0xff]  }
 0x26e   :  { %v1035_v54 = vmul.f32 %v1019_v28, %v2968_v62  ;;  %1951 = vmatprep.subr.bf16.mxu1 %v2040_v32  ;;  %v1782_v62 = vld [vmem:[%s3290_s9] ss:$0 sm:$0xff] }
 0x26f   :  { %v1033_v0 = vmul.f32 %v1017_v13, %v2974_v3 }
 0x270   :  { %1936 = vmatmul.mubr.bf16.gmra.mrb[8].mxu1 %v1041_v10  ;;  %v1043_v48 = vpack.c.bf16 %v1035_v54, %v1034_v29  ;;  %v2045_v10 = vld [vmem:[%s3293_s12 + $0x8] sm:$0xff]   ;;  %s1747_s12 = sshll.u32 %s2204_s11, 4  ;;  %s1748_s12 = int_to_ptr.vmem [resolvable:$true] %s1747_s12 }
 0x271   :  { %v1042_v44 = vpack.c.bf16 %v1033_v0, %v1032_v30  ;;  %1952 = vmatpush3.bf16.msra.mxu1 %v2040_v32  ;;  %1977 = vmatprep.subr.bf16.mxu0 %v2045_v10  ;;  %s2180_s26 = scalar_lea.vmem %s1748_s12, 2048  ;;  %p2185_p1 = scmp.lt.s32.totalorder %s1748_s12, %s1748_s12 }
 0x272   :  { %1953 = vmatprep.subr.bf16.mxu1 %v2041_v2  ;;  %1978 = vmatpush3.bf16.msra.mxu0 %v2045_v10  ;;  %p2181_p0 = scmp.ne.s32.totalorder %s1748_s12, %s2180_s26  ;;  %p2186_p2 = scmp.lt.s32.totalorder %s2180_s26, %s2180_s26 }
 0x273   :  { %1939 = vmatprep.mubr.bf16.mxu1 %v1042_v44  ;;  %1979 = vmatprep.subr.bf16.mxu0 %v2046_v39 }
 0x274   :  { %p2187_p3 = por %p2186_p2, %p2185_p1 }
 0x275   :  { %1954 = vmatpush3.bf16.msra.mxu1 %v2041_v2 }
 0x276   :  { %1955 = vmatprep.subr.bf16.mxu1 %v2042_v57  ;;  %1980 = vmatpush3.bf16.msra.mxu0 %v2046_v39  ;;  %p2188_p4 = pnand %p2187_p3, %p2181_p0 }
 0x277   :  { %1981 = vmatprep.subr.bf16.mxu0 %v2047_v20 }
 0x278   :  { %1940 = vmatmul.mubr.bf16.gmra.mrb[12].mxu1 %v1043_v48 }
 0x279   :  { %1956 = vmatpush3.bf16.msra.mxu1 %v2042_v57 }
 0x27a   :  { %1957 = vmatprep.subr.bf16.mxu1 %v2043_v59  ;;  %1982 = vmatpush3.bf16.msra.mxu0 %v2047_v20 }
 0x27b   :  { %1983 = vmatprep.subr.bf16.mxu0 %v2048_v52 }
 0x27d   :  { %1958 = vmatpush3.bf16.msra.mxu1 %v2043_v59 }
 0x27e   :  { %1984 = vmatpush3.bf16.msra.mxu0 %v2048_v52 }
 0x27f   :  { %1985 = vmatprep.subr.bf16.mxu0 %v2049_v43 }
 0x282   :  { %1986 = vmatpush3.bf16.msra.mxu0 %v2049_v43 }
 0x283   :  { %1987 = vmatprep.subr.bf16.mxu0 %v2050_v38 }
 0x286   :  { %1988 = vmatpush3.bf16.msra.mxu0 %v2050_v38 }
 0x287   :  { %1989 = vmatprep.subr.bf16.mxu0 %v2051_v19 }
 0x28a   :  { %1990 = vmatpush3.bf16.msra.mxu0 %v2051_v19 }
 0x333   :  { %v1929_v3 = vpop.f32.mrb[0].mxu1 }
 0x334   :  { %v1158_v1 = vadd.f32 %v1929_v3, %v1782_v62  ;;  %v1149_v14 = vpop.f32.mrb[1].mxu1 }
 0x335   :  { %v1150_v46 = vadd.f32 %v1782_v62, %v1149_v14  ;;  %v1930_v5 = vpop.f32.mrb[2].mxu1 }
 0x336   :  { %1215 = vst.msk [vmem:[#allocation2 + $0x10] sm:$0xff] %vm1212_vm2, %v1158_v1  ;;  %v1161_v40 = vadd.f32 %v1930_v5, %v1782_v62  ;;  %v1152_v50 = vpop.f32.mrb[3].mxu1 }
 0x337   :  { %1213 = vst.msk [vmem:[#allocation2] sm:$0xff] %vm1212_vm2, %v1150_v46  ;;  %v1153_v25 = vadd.f32 %v1782_v62, %v1152_v50 }
 0x338   :  { %1216 = vst.msk [vmem:[#allocation2 + $0x18] sm:$0xff] %vm1212_vm2, %v1161_v40  ;;  %v1230_v49 = vpack.c.bf16 %v1161_v40, %v1158_v1 }
 0x339   :  { %1214 = vst.msk [vmem:[#allocation2 + $0x8] sm:$0xff] %vm1212_vm2, %v1153_v25  ;;  %v1229_v45 = vpack.c.bf16 %v1153_v25, %v1150_v46 }
 0x33b   :  { %v1933_v15 = vpop.f32.mrb[4].mxu1  ;;  %1959 = vmatprep.mubr.bf16.mxu1 %v1229_v45 }
 0x33c   :  { %v1174_v36 = vadd.f32 %v1933_v15, %v1782_v62  ;;  %v1165_v61 = vpop.f32.mrb[5].mxu1  ;;  %1960 = vmatmul.mubr.bf16.vlgmr.msra.gmra.mrb[16].mxu1 %v1230_v49 }
 0x33d   :  { %v1166_v17 = vadd.f32 %v1782_v62, %v1165_v61  ;;  %v1934_v42 = vpop.f32.mrb[6].mxu1 }
 0x33e   :  { %1219 = vst.msk [vmem:[#allocation2 + $0x30] sm:$0xff] %vm1212_vm2, %v1174_v36  ;;  %v1177_v7 = vadd.f32 %v1934_v42, %v1782_v62  ;;  %v1168_v41 = vpop.f32.mrb[7].mxu1 }
 0x33f   :  { %1217 = vst.msk [vmem:[#allocation2 + $0x20] sm:$0xff] %vm1212_vm2, %v1166_v17  ;;  %v1169_v56 = vadd.f32 %v1782_v62, %v1168_v41 }
 0x340   :  { %1220 = vst.msk [vmem:[#allocation2 + $0x38] sm:$0xff] %vm1212_vm2, %v1177_v7  ;;  %v1232_v26 = vpack.c.bf16 %v1177_v7, %v1174_v36 }
 0x341   :  { %1218 = vst.msk [vmem:[#allocation2 + $0x28] sm:$0xff] %vm1212_vm2, %v1169_v56  ;;  %v1231_v11 = vpack.c.bf16 %v1169_v56, %v1166_v17 }
 0x343   :  { %v1937_v51 = vpop.f32.mrb[8].mxu1  ;;  %1963 = vmatprep.mubr.bf16.mxu1 %v1231_v11 }
 0x344   :  { %v1190_v8 = vadd.f32 %v1937_v51, %v1782_v62  ;;  %v1181_v16 = vpop.f32.mrb[9].mxu1  ;;  %1964 = vmatmul.mubr.bf16.gmra.mrb[20].mxu1 %v1232_v26 }
 0x345   :  { %v1182_v6 = vadd.f32 %v1782_v62, %v1181_v16  ;;  %v1938_v23 = vpop.f32.mrb[10].mxu1 }
 0x346   :  { %1223 = vst.msk [vmem:[#allocation2 + $0x50] sm:$0xff] %vm1212_vm2, %v1190_v8  ;;  %v1193_v33 = vadd.f32 %v1938_v23, %v1782_v62  ;;  %v1184_v9 = vpop.f32.mrb[11].mxu1 }
 0x347   :  { %1221 = vst.msk [vmem:[#allocation2 + $0x40] sm:$0xff] %vm1212_vm2, %v1182_v6  ;;  %v1185_v37 = vadd.f32 %v1782_v62, %v1184_v9 }
 0x348   :  { %1224 = vst.msk [vmem:[#allocation2 + $0x58] sm:$0xff] %vm1212_vm2, %v1193_v33  ;;  %v1234_v12 = vpack.c.bf16 %v1193_v33, %v1190_v8 }
 0x349   :  { %1222 = vst.msk [vmem:[#allocation2 + $0x48] sm:$0xff] %vm1212_vm2, %v1185_v37  ;;  %v1233_v4 = vpack.c.bf16 %v1185_v37, %v1182_v6 }
 0x34b   :  { %v1941_v63 = vpop.f32.mrb[12].mxu1  ;;  %1967 = vmatprep.mubr.bf16.mxu1 %v1233_v4 }
 0x34c   :  { %v1206_v22 = vadd.f32 %v1941_v63, %v1782_v62  ;;  %v1197_v35 = vpop.f32.mrb[13].mxu1  ;;  %1968 = vmatmul.mubr.bf16.gmra.mrb[24].mxu1 %v1234_v12 }
 0x34d   :  { %v1198_v18 = vadd.f32 %v1782_v62, %v1197_v35  ;;  %v1942_v34 = vpop.f32.mrb[14].mxu1 }
 0x34e   :  { %1227 = vst.msk [vmem:[#allocation2 + $0x70] sm:$0xff] %vm1212_vm2, %v1206_v22  ;;  %v1209_v53 = vadd.f32 %v1942_v34, %v1782_v62  ;;  %v1200_v60 = vpop.f32.mrb[15].mxu1 }
 0x34f   :  { %1225 = vst.msk [vmem:[#allocation2 + $0x60] sm:$0xff] %vm1212_vm2, %v1198_v18  ;;  %v1201_v31 = vadd.f32 %v1782_v62, %v1200_v60 }
 0x350   :  { %1228 = vst.msk [vmem:[#allocation2 + $0x78] sm:$0xff] %vm1212_vm2, %v1209_v53  ;;  %v1236_v55 = vpack.c.bf16 %v1209_v53, %v1206_v22 }
 0x351   :  { %1226 = vst.msk [vmem:[#allocation2 + $0x68] sm:$0xff] %vm1212_vm2, %v1201_v31  ;;  %v1235_v58 = vpack.c.bf16 %v1201_v31, %v1198_v18 }
 0x353   :  { %1971 = vmatprep.mubr.bf16.mxu1 %v1235_v58 }
 0x354   :  { %1972 = vmatmul.mubr.bf16.gmra.mrb[28].mxu1 %v1236_v55 }
 0x40f   :  { %v1961_v32 = vpop.f32.mrb[16].mxu1 }
 0x410   :  { %v3075_v27 = vadd.f32 %v1961_v32, %v3072_v24  ;;  %v1342_v21 = vpop.f32.mrb[17].mxu1 }
 0x411   :  { %v3078_v28 = vadd.f32 %v3072_v24, %v1342_v21  ;;  %v1962_v13 = vpop.f32.mrb[18].mxu1 }
 0x412   :  { %v1407_v29 = vmul.f32 %v3075_v27, %v3075_v27  ;;  %v3083_v54 = vadd.f32 %v1962_v13, %v3072_v24  ;;  %v1345_v2 = vpop.f32.mrb[19].mxu1 }
 0x413   :  { %v1405_v30 = vmul.f32 %v3078_v28, %v3078_v28  ;;  %v3088_v0 = vadd.f32 %v3072_v24, %v1345_v2 }
 0x414   :  { %v1423_v48 = vmul.f32 %v1407_v29, %v3075_v27  ;;  %v1408_v44 = vmul.f32 %v3083_v54, %v3083_v54 }
 0x415   :  { %v1421_v57 = vmul.f32 %v1405_v30, %v3078_v28  ;;  %v1406_v59 = vmul.f32 %v3088_v0, %v3088_v0 }
 0x416   :  { %v1439_v62 = vmul.f32 0.044715, %v1423_v48  ;;  %v1424_v3 = vmul.f32 %v1408_v44, %v3083_v54 }
 0x417   :  { %v1437_v1 = vmul.f32 0.044715, %v1421_v57  ;;  %v1422_v14 = vmul.f32 %v1406_v59, %v3088_v0  ;;  %v1965_v46 = vpop.f32.mrb[20].mxu1 }
 0x418   :  { %v1455_v5 = vadd.f32 %v1439_v62, %v3075_v27  ;;  %v1440_v40 = vmul.f32 0.044715, %v1424_v3  ;;  %v3100_v50 = vadd.f32 %v1965_v46, %v3072_v24  ;;  %v1358_v25 = vpop.f32.mrb[21].mxu1 }
 0x419   :  { %v1453_v49 = vadd.f32 %v1437_v1, %v3078_v28  ;;  %v1438_v45 = vmul.f32 0.044715, %v1422_v14  ;;  %v3104_v15 = vadd.f32 %v3072_v24, %v1358_v25  ;;  %v1966_v36 = vpop.f32.mrb[22].mxu1 }
 0x41a   :  { %v1471_v61 = vmul.f32 0.7978846, %v1455_v5  ;;  %v1456_v17 = vadd.f32 %v1440_v40, %v3083_v54  ;;  %v1411_v42 = vmul.f32 %v3100_v50, %v3100_v50  ;;  %v3110_v7 = vadd.f32 %v1966_v36, %v3072_v24  ;;  %v1361_v41 = vpop.f32.mrb[23].mxu1 }
 0x41b   :  { %v1469_v56 = vmul.f32 0.7978846, %v1453_v49  ;;  %v1454_v26 = vadd.f32 %v1438_v45, %v3088_v0  ;;  %v1409_v11 = vmul.f32 %v3104_v15, %v3104_v15  ;;  %v3116_v51 = vadd.f32 %v3072_v24, %v1361_v41 }
 0x41c   :  { %2148 = vtanh.f32 %v1471_v61  ;;  %v1472_v8 = vmul.f32 0.7978846, %v1456_v17  ;;  %v1427_v16 = vmul.f32 %v1411_v42, %v3100_v50  ;;  %v1412_v6 = vmul.f32 %v3110_v7, %v3110_v7 }
 0x41d   :  { %2150 = vtanh.f32 %v1469_v56  ;;  %v1470_v23 = vmul.f32 0.7978846, %v1454_v26  ;;  %v1425_v33 = vmul.f32 %v1409_v11, %v3104_v15  ;;  %v1410_v9 = vmul.f32 %v3116_v51, %v3116_v51 }
 0x41e   :  { %2152 = vtanh.f32 %v1472_v8  ;;  %v1443_v37 = vmul.f32 0.044715, %v1427_v16  ;;  %v1428_v12 = vmul.f32 %v1412_v6, %v3110_v7 }
 0x41f   :  { %v1441_v4 = vmul.f32 0.044715, %v1425_v33  ;;  %v1426_v63 = vmul.f32 %v1410_v9, %v3116_v51  ;;  %v1969_v22 = vpop.f32.mrb[24].mxu1  ;;  %2154 = vtanh.f32 %v1470_v23 }
 0x420   :  { %v1459_v35 = vadd.f32 %v1443_v37, %v3100_v50  ;;  %v1444_v18 = vmul.f32 0.044715, %v1428_v12  ;;  %v3128_v34 = vadd.f32 %v1969_v22, %v3072_v24  ;;  %v1374_v53 = vpop.f32.mrb[25].mxu1 }
 0x421   :  { %v1457_v60 = vadd.f32 %v1441_v4, %v3104_v15  ;;  %v1442_v31 = vmul.f32 0.044715, %v1426_v63  ;;  %v3132_v55 = vadd.f32 %v3072_v24, %v1374_v53  ;;  %v1970_v58 = vpop.f32.mrb[26].mxu1 }
 0x422   :  { %v1475_v47 = vmul.f32 0.7978846, %v1459_v35  ;;  %v1460_v10 = vadd.f32 %v1444_v18, %v3110_v7  ;;  %v1415_v39 = vmul.f32 %v3128_v34, %v3128_v34  ;;  %v3138_v20 = vadd.f32 %v1970_v58, %v3072_v24  ;;  %v1377_v52 = vpop.f32.mrb[27].mxu1 }
 0x423   :  { %v1473_v43 = vmul.f32 0.7978846, %v1457_v60  ;;  %v1458_v38 = vadd.f32 %v1442_v31, %v3116_v51  ;;  %v1413_v19 = vmul.f32 %v3132_v55, %v3132_v55  ;;  %v3144_v32 = vadd.f32 %v3072_v24, %v1377_v52 }
 0x424   :  { %2156 = vtanh.f32 %v1475_v47  ;;  %v1476_v21 = vmul.f32 0.7978846, %v1460_v10  ;;  %v1431_v13 = vmul.f32 %v1415_v39, %v3128_v34  ;;  %v1416_v29 = vmul.f32 %v3138_v20, %v3138_v20 }
 0x425   :  { %2158 = vtanh.f32 %v1473_v43  ;;  %v1474_v2 = vmul.f32 0.7978846, %v1458_v38  ;;  %v1429_v30 = vmul.f32 %v1413_v19, %v3132_v55  ;;  %v1414_v48 = vmul.f32 %v3144_v32, %v3144_v32 }
 0x426   :  { %v2149_v44 = vpop.eup %2148  ;;  %2160 = vtanh.f32 %v1476_v21  ;;  %v1447_v57 = vmul.f32 0.044715, %v1431_v13  ;;  %v1432_v59 = vmul.f32 %v1416_v29, %v3138_v20 }
 0x427   :  { %v2151_v62 = vpop.eup %2150  ;;  %v1503_v3 = vadd.f32 1.0, %v2149_v44  ;;  %2162 = vtanh.f32 %v1474_v2  ;;  %v1445_v1 = vmul.f32 0.044715, %v1429_v30  ;;  %v1430_v14 = vmul.f32 %v1414_v48, %v3144_v32  ;;  %v1973_v46 = vpop.f32.mrb[28].mxu1 }
 0x428   :  { %v2153_v5 = vpop.eup %2152  ;;  %v1463_v40 = vadd.f32 %v1447_v57, %v3128_v34  ;;  %v1448_v25 = vmul.f32 0.044715, %v1432_v59  ;;  %v3156_v49 = vadd.f32 %v1973_v46, %v3072_v24  ;;  %v1390_v45 = vpop.f32.mrb[29].mxu1  ;;  %v1501_v36 = vadd.f32 1.0, %v2151_v62 }
 0x429   :  { %v1519_v61 = vmul.f32 0.5, %v1503_v3  ;;  %v1504_v17 = vadd.f32 1.0, %v2153_v5  ;;  %v1461_v42 = vadd.f32 %v1445_v1, %v3132_v55  ;;  %v1446_v41 = vmul.f32 0.044715, %v1430_v14  ;;  %v1974_v56 = vpop.f32.mrb[30].mxu1  ;;  %v2155_v23 = vpop.eup %2154 }
 0x42a   :  { %v1479_v26 = vmul.f32 0.7978846, %v1463_v40  ;;  %v1464_v11 = vadd.f32 %v1448_v25, %v3138_v20  ;;  %v1419_v8 = vmul.f32 %v3156_v49, %v3156_v49  ;;  %v3163_v16 = vadd.f32 %v3072_v24, %v1390_v45  ;;  %v1393_v6 = vpop.f32.mrb[31].mxu1 }
 0x42b   :  { %v1535_v33 = vmul.f32 %v1519_v61, %v3075_v27  ;;  %v1520_v9 = vmul.f32 0.5, %v1504_v17  ;;  %v1477_v37 = vmul.f32 0.7978846, %v1461_v42  ;;  %v1462_v12 = vadd.f32 %v1446_v41, %v3144_v32 }
 0x42c   :  { %2164 = vtanh.f32 %v1479_v26  ;;  %v1480_v4 = vmul.f32 0.7978846, %v1464_v11  ;;  %v1435_v63 = vmul.f32 %v1419_v8, %v3156_v49  ;;  %v1417_v22 = vmul.f32 %v3163_v16, %v3163_v16 }
 0x42d   :  { %v1536_v35 = vmul.f32 %v1520_v9, %v3083_v54  ;;  %2166 = vtanh.f32 %v1477_v37  ;;  %v1478_v18 = vmul.f32 0.7978846, %v1462_v12  ;;  %v3172_v53 = vadd.f32 %v1974_v56, %v3072_v24 }
 0x42e   :  { %v2157_v60 = vpop.eup %2156  ;;  %2168 = vtanh.f32 %v1480_v4  ;;  %v1451_v27 = vmul.f32 0.044715, %v1435_v63  ;;  %v1433_v31 = vmul.f32 %v1417_v22, %v3163_v16  ;;  %v3176_v58 = vadd.f32 %v3072_v24, %v1393_v6 }
 0x42f   :  { %v2159_v47 = vpop.eup %2158  ;;  %v1550_v10 = vpack.c.bf16 %v1536_v35, %v1535_v33  ;;  %2170 = vtanh.f32 %v1478_v18  ;;  %v1420_v39 = vmul.f32 %v3172_v53, %v3172_v53  ;;  %v1502_v54 = vadd.f32 1.0, %v2155_v23 }
 0x430   :  { %v2161_v52 = vpop.eup %2160  ;;  %v1467_v43 = vadd.f32 %v1451_v27, %v3156_v49  ;;  %v1449_v38 = vmul.f32 0.044715, %v1433_v31  ;;  %v1418_v19 = vmul.f32 %v3176_v58, %v3176_v58  ;;  %v1517_v21 = vmul.f32 0.5, %v1501_v36 }
 0x431   :  { %v2163_v13 = vpop.eup %2162  ;;  %v1436_v29 = vmul.f32 %v1420_v39, %v3172_v53  ;;  %v1518_v24 = vmul.f32 0.5, %v1502_v54  ;;  %v1505_v2 = vadd.f32 1.0, %v2159_v47  ;;  %v1507_v30 = vadd.f32 1.0, %v2157_v60 }
 0x432   :  { %v1483_v48 = vmul.f32 0.7978846, %v1467_v43  ;;  %v1465_v44 = vadd.f32 %v1449_v38, %v3163_v16  ;;  %v1434_v57 = vmul.f32 %v1418_v19, %v3176_v58  ;;  %v1533_v59 = vmul.f32 %v1517_v21, %v3078_v28 }
 0x433   :  { %v1452_v62 = vmul.f32 0.044715, %v1436_v29  ;;  %v1534_v3 = vmul.f32 %v1518_v24, %v3088_v0  ;;  %v1506_v1 = vadd.f32 1.0, %v2163_v13  ;;  %v1521_v14 = vmul.f32 0.5, %v1505_v2 }
 0x434   :  { %2172 = vtanh.f32 %v1483_v48  ;;  %v1481_v46 = vmul.f32 0.7978846, %v1465_v44  ;;  %v1450_v5 = vmul.f32 0.044715, %v1434_v57  ;;  %v1508_v40 = vadd.f32 1.0, %v2161_v52 }
 0x435   :  { %v1468_v25 = vadd.f32 %v1452_v62, %v3172_v53  ;;  %v1549_v45 = vpack.c.bf16 %v1534_v3, %v1533_v59  ;;  %v1522_v36 = vmul.f32 0.5, %v1506_v1  ;;  %v1523_v42 = vmul.f32 0.5, %v1507_v30 }
 0x436   :  { %v2165_v61 = vpop.eup %2164  ;;  %2174 = vtanh.f32 %v1481_v46  ;;  %v1466_v17 = vadd.f32 %v1450_v5, %v3176_v58  ;;  %v1524_v41 = vmul.f32 0.5, %v1508_v40  ;;  %v1537_v0 = vmul.f32 %v1521_v14, %v3104_v15 }
 0x437   :  { %v2167_v28 = vpop.eup %2166  ;;  %v1484_v56 = vmul.f32 0.7978846, %v1468_v25  ;;  %1991 = vmatprep.mubr.bf16.mxu0 %v1549_v45  ;;  %v1538_v26 = vmul.f32 %v1522_v36, %v3116_v51  ;;  %v1511_v11 = vadd.f32 1.0, %v2165_v61  ;;  %v1539_v23 = vmul.f32 %v1523_v42, %v3100_v50 }
 0x438   :  { %v2169_v8 = vpop.eup %2168  ;;  %v1482_v6 = vmul.f32 0.7978846, %v1466_v17  ;;  %1992 = vmatmul.mubr.bf16.vlgmr.msra.gmra.mrb[16].mxu0 %v1550_v10  ;;  %v1540_v33 = vmul.f32 %v1524_v41, %v3110_v7  ;;  %v1509_v9 = vadd.f32 1.0, %v2167_v28 }
 0x439   :  { %v2171_v37 = vpop.eup %2170  ;;  %2176 = vtanh.f32 %v1484_v56  ;;  %v1551_v12 = vpack.c.bf16 %v1538_v26, %v1537_v0  ;;  %v1512_v4 = vadd.f32 1.0, %v2169_v8  ;;  %v1527_v63 = vmul.f32 0.5, %v1511_v11 }
 0x43a   :  { %2178 = vtanh.f32 %v1482_v6  ;;  %v1552_v22 = vpack.c.bf16 %v1540_v33, %v1539_v23  ;;  %v1510_v35 = vadd.f32 1.0, %v2171_v37  ;;  %v1525_v15 = vmul.f32 0.5, %v1509_v9 }
 0x43b   :  { %1995 = vmatprep.mubr.bf16.mxu0 %v1551_v12  ;;  %v1528_v51 = vmul.f32 0.5, %v1512_v4  ;;  %v1543_v60 = vmul.f32 %v1527_v63, %v3128_v34 }
 0x43c   :  { %v1526_v18 = vmul.f32 0.5, %v1510_v35  ;;  %v1541_v7 = vmul.f32 %v1525_v15, %v3132_v55 }
 0x43d   :  { %v1544_v27 = vmul.f32 %v1528_v51, %v3138_v20 }
 0x43e   :  { %v2173_v50 = vpop.eup %2172  ;;  %v1542_v31 = vmul.f32 %v1526_v18, %v3144_v32 }
 0x43f   :  { %v1554_v47 = vpack.c.bf16 %v1544_v27, %v1543_v60  ;;  %v1515_v54 = vadd.f32 1.0, %v2173_v50 }
 0x440   :  { %v2175_v10 = vpop.eup %2174  ;;  %1996 = vmatmul.mubr.bf16.gmra.mrb[20].mxu0 %v1552_v22  ;;  %v1553_v39 = vpack.c.bf16 %v1542_v31, %v1541_v7 }
 0x441   :  { %v1513_v52 = vadd.f32 1.0, %v2175_v10  ;;  %v1531_v21 = vmul.f32 0.5, %v1515_v54 }
 0x442   :  { %1999 = vmatprep.mubr.bf16.mxu0 %v1553_v39 }
 0x443   :  { %v2177_v43 = vpop.eup %2176  ;;  %v1529_v34 = vmul.f32 0.5, %v1513_v52  ;;  %v1547_v55 = vmul.f32 %v1531_v21, %v3156_v49 }
 0x444   :  { %v2179_v38 = vpop.eup %2178  ;;  %v1516_v19 = vadd.f32 1.0, %v2177_v43 }
 0x445   :  { %v1514_v13 = vadd.f32 1.0, %v2179_v38  ;;  %v1545_v24 = vmul.f32 %v1529_v34, %v3163_v16 }
 0x446   :  { %v1532_v29 = vmul.f32 0.5, %v1516_v19 }
 0x447   :  { %v1530_v20 = vmul.f32 0.5, %v1514_v13 }
 0x448   :  { %2000 = vmatmul.mubr.bf16.gmra.mrb[24].mxu0 %v1554_v47  ;;  %v1548_v32 = vmul.f32 %v1532_v29, %v3172_v53 }
 0x449   :  { %v1546_v2 = vmul.f32 %v1530_v20, %v3176_v58 }
 0x44a   :  { %v1556_v30 = vpack.c.bf16 %v1548_v32, %v1547_v55 }
 0x44b   :  { %v1555_v48 = vpack.c.bf16 %v1546_v2, %v1545_v24 }
 0x44d   :  { %2003 = vmatprep.mubr.bf16.mxu0 %v1555_v48 }
 0x450   :  { %2004 = vmatmul.mubr.bf16.gmra.mrb[28].mxu0 %v1556_v30 }
 0x451   :  { %2191 = shalt.err (!%p2188_p4)
}
 0x452   :  { %s2192_s2 = scalar_lea.hbm %s3295_s14, 2048 }
 0x453   :  { %p2193_p5 = scmp.ne.s32.totalorder %s3295_s14, %s2192_s2  ;;  %p2196_p6 = scmp.lt.u32.totalorder %s2192_s2, %s3295_s14 }
 0x455   :  { %p2198_p7 = pnand %p2196_p6, %p2193_p5 }
 0x457   :  { %2201 = shalt.err (!%p2198_p7)
}
 0x458   :  { %s2205_s9 = smov 128   ;;  %s2206_s10 = smov 8   ;;  %v1800_v49 = vld [vmem:[%s3294_s13] ss:$0 sm:$0xff]  ;;  %vm1725_vm3 = vcmask 31744  }
 0x459   :  { %1753 = dma.vmem_to_hbm [thread:$0]  %s1748_s12, 2048, %s3295_s14, [#allocation3], %s2205_s9, %s2205_s9, %s2206_s10  }
 0x50b   :  { %v1993_v16 = vpop.f32.mrb[16].mxu0 }
 0x50c   :  { %v1671_v53 = vadd.f32 %v1993_v16, %v1800_v49  ;;  %v1662_v58 = vpop.f32.mrb[17].mxu0 }
 0x50d   :  { %v1663_v44 = vadd.f32 %v1800_v49, %v1662_v58  ;;  %v1994_v57 = vpop.f32.mrb[18].mxu0 }
 0x50e   :  { %1728 = vst.msk [vmem:[%s3296_s15 + $0x10] sm:$0xff] %vm1725_vm3, %v1671_v53  ;;  %v1674_v59 = vadd.f32 %v1994_v57, %v1800_v49  ;;  %v1665_v62 = vpop.f32.mrb[19].mxu0 }
 0x50f   :  { %1726 = vst.msk [vmem:[%s3296_s15] sm:$0xff] %vm1725_vm3, %v1663_v44  ;;  %v1666_v3 = vadd.f32 %v1800_v49, %v1665_v62 }
 0x510   :  { %1729 = vst.msk [vmem:[%s3296_s15 + $0x18] sm:$0xff] %vm1725_vm3, %v1674_v59 }
 0x511   :  { %1727 = vst.msk [vmem:[%s3296_s15 + $0x8] sm:$0xff] %vm1725_vm3, %v1666_v3 }
 0x513   :  { %v1997_v1 = vpop.f32.mrb[20].mxu0 }
 0x514   :  { %v1687_v14 = vadd.f32 %v1997_v1, %v1800_v49  ;;  %v1678_v46 = vpop.f32.mrb[21].mxu0 }
 0x515   :  { %v1679_v5 = vadd.f32 %v1800_v49, %v1678_v46  ;;  %v1998_v40 = vpop.f32.mrb[22].mxu0 }
 0x516   :  { %1732 = vst.msk [vmem:[%s3296_s15 + $0x30] sm:$0xff] %vm1725_vm3, %v1687_v14  ;;  %v1690_v25 = vadd.f32 %v1998_v40, %v1800_v49  ;;  %v1681_v45 = vpop.f32.mrb[23].mxu0 }
 0x517   :  { %1730 = vst.msk [vmem:[%s3296_s15 + $0x20] sm:$0xff] %vm1725_vm3, %v1679_v5  ;;  %v1682_v36 = vadd.f32 %v1800_v49, %v1681_v45 }
 0x518   :  { %1733 = vst.msk [vmem:[%s3296_s15 + $0x38] sm:$0xff] %vm1725_vm3, %v1690_v25 }
 0x519   :  { %1731 = vst.msk [vmem:[%s3296_s15 + $0x28] sm:$0xff] %vm1725_vm3, %v1682_v36 }
 0x51b   :  { %v2001_v61 = vpop.f32.mrb[24].mxu0 }
 0x51c   :  { %v1703_v17 = vadd.f32 %v2001_v61, %v1800_v49  ;;  %v1694_v42 = vpop.f32.mrb[25].mxu0 }
 0x51d   :  { %v1695_v41 = vadd.f32 %v1800_v49, %v1694_v42  ;;  %v2002_v28 = vpop.f32.mrb[26].mxu0 }
 0x51e   :  { %1736 = vst.msk [vmem:[%s3296_s15 + $0x50] sm:$0xff] %vm1725_vm3, %v1703_v17  ;;  %v1706_v56 = vadd.f32 %v2002_v28, %v1800_v49  ;;  %v1697_v0 = vpop.f32.mrb[27].mxu0 }
 0x51f   :  { %1734 = vst.msk [vmem:[%s3296_s15 + $0x40] sm:$0xff] %vm1725_vm3, %v1695_v41  ;;  %v1698_v26 = vadd.f32 %v1800_v49, %v1697_v0 }
 0x520   :  { %1737 = vst.msk [vmem:[%s3296_s15 + $0x58] sm:$0xff] %vm1725_vm3, %v1706_v56 }
 0x521   :  { %1735 = vst.msk [vmem:[%s3296_s15 + $0x48] sm:$0xff] %vm1725_vm3, %v1698_v26 }
 0x523   :  { %v2005_v11 = vpop.f32.mrb[28].mxu0 }
 0x524   :  { %v1719_v8 = vadd.f32 %v2005_v11, %v1800_v49  ;;  %v1710_v6 = vpop.f32.mrb[29].mxu0 }
 0x525   :  { %v1711_v23 = vadd.f32 %v1800_v49, %v1710_v6  ;;  %v2006_v33 = vpop.f32.mrb[30].mxu0 }
 0x526   :  { %1740 = vst.msk [vmem:[%s3296_s15 + $0x70] sm:$0xff] %vm1725_vm3, %v1719_v8  ;;  %v1722_v9 = vadd.f32 %v2006_v33, %v1800_v49  ;;  %v1713_v37 = vpop.f32.mrb[31].mxu0 }
 0x527   :  { %1738 = vst.msk [vmem:[%s3296_s15 + $0x60] sm:$0xff] %vm1725_vm3, %v1711_v23  ;;  %v1714_v12 = vadd.f32 %v1800_v49, %v1713_v37 }
 0x528   :  { %1741 = vst.msk [vmem:[%s3296_s15 + $0x78] sm:$0xff] %vm1725_vm3, %v1722_v9 }
 0x529   :  { %1739 = vst.msk [vmem:[%s3296_s15 + $0x68] sm:$0xff] %vm1725_vm3, %v1714_v12 }
 0x52a   :  { %2202 = dma.done.wait [#allocation3], 2048  }
 0x52b   :  { %2203 = vsyncadd [#allocation3], 4294965248 }
 0x52c   :  { %1761 = vsyncpa [#allocation3], 1 }

</bundles_post_ra>
